<compile_context>
chip_gen: v7x
topology: tpu7x:2x2x1
jax: 0.10.0
libtpu: 0.0.40
codegen_flags: <defaults>
</compile_context>

<pallas_src>
import functools

import jax
import jax.numpy as jnp
from jax import lax
from jax.experimental import pallas as pl
from jax.experimental.pallas import tpu as pltpu


_VMEM_SPEC = pl.BlockSpec(memory_space=pltpu.MemorySpace.VMEM)
_VMEM_LIMIT = 32 * 1024 * 1024      # safe scoped-VMEM budget on v5e/v6e/v7x


def _ceil_to(x, m):
    return ((x + m - 1) // m) * m


# ---------------------------------------------------------------------------
# Pallas kernels
# ---------------------------------------------------------------------------

def _conv_relu_pool_kernel(p_ref, w_ref, b_ref, o_ref, *, pix):
    """Fused conv (im2col matmul) + bias + ReLU + 2x2/2 maxpool for one image.

    p_ref: (1, Kp, 4*pix) f32  patches; lane axis = [off0 | off1 | off2 | off3],
                               each `pix` (128-aligned) pooled-pixel columns.
    w_ref: (OCp, Kp)      f32  flattened conv weights (PyTorch (C,KH,KW) order).
    b_ref: (OCp, 128)     f32  bias broadcast to a full lane tile.
    o_ref: (1, OCp, pix)  f32  pooled activation, lane-dense pooled pixels.
    """
    # One MXU contraction covering all 4 pooling-window offsets.
    acc = jnp.dot(w_ref[...], p_ref[0], preferred_element_type=jnp.float32)
    # 2x2 maxpool = max over the 4 offset slices (aligned lane slices, VPU).
    m = jnp.maximum(
        jnp.maximum(acc[:, 0 * pix:1 * pix], acc[:, 1 * pix:2 * pix]),
        jnp.maximum(acc[:, 2 * pix:3 * pix], acc[:, 3 * pix:4 * pix]))
    # relu(maxpool(conv) + b) == maxpool(relu(conv + b)); f32 epilogue (v5e-safe).
    o_ref[0] = jnp.maximum(m + b_ref[...][:, :1], 0.0)


def _poly_kernel(x_ref, w_ref, b_ref, o_ref, *, L, Fp):
    """y = bias + sum_{l=1..L} x^l @ W[l-1]; powers on the VPU, L small dots.

    TODO(synk): Qupo is not defined in the source snippet; a monomial basis of
    degrees 1..L plus a bias term is assumed.
    """
    x = x_ref[...]                                   # (B, Fp) f32
    xp = x
    acc = jnp.dot(xp, w_ref[0:Fp, :], preferred_element_type=jnp.float32)
    for l in range(1, L):
        xp = xp * x                                  # next power, f32 on the VPU
        acc = acc + jnp.dot(xp, w_ref[l * Fp:(l + 1) * Fp, :],
                            preferred_element_type=jnp.float32)
    o_ref[...] = acc + b_ref[...]


# ---------------------------------------------------------------------------
# Wrappers (thin XLA glue, compute in Pallas)
# ---------------------------------------------------------------------------

def _pooled_patches(x, kh, kw):
    """Pool-aware im2col: conv patches at stride 2 for each 2x2 pooling offset.

    x: (B, C, H, W) f32.  Returns ((B, K, 4, PH*PW), PH, PW) with
    K = C*kh*kw flattened in PyTorch's (c, kh, kw) weight order and axis 2
    enumerating pooling offsets (p, q) in {0,1}^2.
    """
    B, C, H, W = x.shape
    OH, OW = H - kh + 1, W - kw + 1
    PH, PW = OH // 2, OW // 2
    K = C * kh * kw
    offs = []
    for p in range(2):
        for q in range(2):
            pat = lax.conv_general_dilated_patches(
                x[:, :, p:, q:], filter_shape=(kh, kw), window_strides=(2, 2),
                padding="VALID", dimension_numbers=("NCHW", "OIHW", "NCHW"),
                precision=lax.Precision.HIGHEST)      # (B, K, PH, PW)
            offs.append(pat[:, :, :PH, :PW].reshape(B, K, PH * PW))
    return jnp.stack(offs, axis=2), PH, PW            # (B, K, 4, PH*PW)


def conv_relu_pool_stage(x, w, b):
    """PyTorch Conv2d(valid, stride 1, NCHW) + ReLU + MaxPool2d(2, 2), fused.

    x: (B, C, H, W); w: (OC, Cw, KH, KW) with Cw <= C (extra input channels are
    zero-valued pad channels from the previous stage and get zero weights).
    Returns ((B, OCp, Pp) f32, PH, PW); valid data is out[:, :OC, :PH*PW] with
    pooled pixels flattened row-major (h, w).
    """
    B, C, H, W = x.shape
    OC, Cw, KH, KW = w.shape
    patches, PH, PW = _pooled_patches(x, KH, KW)       # (B, K, 4, PH*PW)
    K, npix = C * KH * KW, PH * PW
    Kp, OCp, Pp = _ceil_to(K, 8), _ceil_to(OC, 8), _ceil_to(npix, 128)

    patches = jnp.pad(patches, ((0, 0), (0, Kp - K), (0, 0), (0, Pp - npix)))
    patches = patches.reshape(B, Kp, 4 * Pp).astype(jnp.float32)
    w_mat = jnp.pad(w, ((0, OCp - OC), (0, C - Cw), (0, 0), (0, 0))).reshape(OCp, K)
    w_mat = jnp.pad(w_mat, ((0, 0), (0, Kp - K))).astype(jnp.float32)
    b_tile = jnp.pad(b.astype(jnp.float32).reshape(OC, 1), ((0, OCp - OC), (0, 0)))
    b_tile = jnp.broadcast_to(b_tile, (OCp, 128))      # full-lane bias tile

    out = pl.pallas_call(
        functools.partial(_conv_relu_pool_kernel, pix=Pp),
        out_shape=jax.ShapeDtypeStruct((B, OCp, Pp), jnp.float32),
        grid=(B,),                                     # >= 2 steps at B >= 2
        in_specs=[pl.BlockSpec((1, Kp, 4 * Pp), lambda i: (i, 0, 0)),
                  pl.BlockSpec((OCp, Kp), lambda i: (0, 0)),
                  pl.BlockSpec((OCp, 128), lambda i: (0, 0))],
        out_specs=pl.BlockSpec((1, OCp, Pp), lambda i: (i, 0, 0)),
        compiler_params=pltpu.CompilerParams(
            dimension_semantics=("parallel",),
            vmem_limit_bytes=_VMEM_LIMIT),
    )(patches, w_mat, b_tile)
    return out, PH, PW


def polymap(x, wp, bp, L):
    """Qupo(L, N_in, N_out): y = bias + sum_{l=1..L} (x**l) @ W[l-1]."""
    B, F = x.shape
    N_out = wp.shape[2]
    Fp, Np = _ceil_to(F, 128), _ceil_to(N_out, 128)

    x_pad = jnp.pad(x.astype(jnp.float32), ((0, 0), (0, Fp - F)))
    w_big = jnp.pad(wp.astype(jnp.float32),
                    ((0, 0), (0, Fp - F), (0, Np - N_out))).reshape(L * Fp, Np)
    b_row = jnp.pad(bp.astype(jnp.float32).reshape(1, N_out),
                    ((0, 0), (0, Np - N_out)))

    out = pl.pallas_call(
        functools.partial(_poly_kernel, L=L, Fp=Fp),
        out_shape=jax.ShapeDtypeStruct((B, Np), jnp.float32),
        in_specs=[_VMEM_SPEC, _VMEM_SPEC, _VMEM_SPEC],
        out_specs=_VMEM_SPEC,
        compiler_params=pltpu.CompilerParams(vmem_limit_bytes=_VMEM_LIMIT),
    )(x_pad, w_big, b_row)
    return out[:, :N_out]


def polycnn_forward(x, params, L):
    # TODO(synk): at tiny batch the remaining wall clock is 3 pallas_call
    # launches + XLA patch glue; fusing both conv stages (in-kernel im2col on
    # the VMEM-resident activation) would remove it but needs strided
    # in-kernel gathers that Mosaic does not express cleanly yet.
    B = x.shape[0]
    # Stage 1: conv1(3->6, 5x5) + relu + pool -> (B, 8, 256), valid (B, 6, 196).
    a1, PH1, PW1 = conv_relu_pool_stage(x, params["w1"], params["b1"])
    # Batch-major output -> stage 2 consumes it with a reshape only (no
    # transpose); pad channels 6,7 are exactly zero and get zero stage-2 weights.
    a1 = a1[:, :, :PH1 * PW1].reshape(B, a1.shape[1], PH1, PW1)
    # Stage 2: conv2(6->16, 5x5) + relu + pool -> (B, 16, 128), valid (B, 16, 25).
    a2, PH2, PW2 = conv_relu_pool_stage(a1, params["w2"], params["b2"])
    # Flatten in PyTorch .view(-1, 16*5*5) order (c, h, w) — reshape only.
    oc2 = params["w2"].shape[0]
    feats = a2[:, :oc2, :PH2 * PW2].reshape(B, oc2 * PH2 * PW2)
    return polymap(feats, params["wp"], params["bp"], L)


# ---------------------------------------------------------------------------
# Pure-XLA f32 reference (for the in-script numerical self-check)
# ---------------------------------------------------------------------------

def polycnn_reference(x, params, L):
    def conv(v, w, b):
        y = lax.conv_general_dilated(v, w, (1, 1), "VALID",
                                     dimension_numbers=("NCHW", "OIHW", "NCHW"),
                                     precision=lax.Precision.HIGHEST)
        return y + b.reshape(1, -1, 1, 1)

    def pool(v):
        return lax.reduce_window(v, -jnp.inf, lax.max,
                                 (1, 1, 2, 2), (1, 1, 2, 2), "VALID")

    a = pool(jax.nn.relu(conv(x, params["w1"], params["b1"])))
    a = pool(jax.nn.relu(conv(a, params["w2"], params["b2"])))
    f = a.reshape(a.shape[0], -1)
    y = jnp.broadcast_to(params["bp"].reshape(1, -1),
                         (f.shape[0], params["bp"].shape[0]))
    for l in range(1, L + 1):
        y = y + jnp.matmul(f ** l, params["wp"][l - 1],
                           precision=lax.Precision.HIGHEST)
    return y


# ---------------------------------------------------------------------------
# Deterministic parameter construction (PyTorch-like uniform fan-in init)
# ---------------------------------------------------------------------------

def init_params(key, L):
    ks = jax.random.split(key, 6)

    def u(k, shape, fan_in):
        bound = 1.0 / jnp.sqrt(jnp.float32(fan_in))
        return jax.random.uniform(k, shape, jnp.float32, -bound, bound)

    return {
        "w1": u(ks[0], (6, 3, 5, 5), 3 * 5 * 5),
        "b1": u(ks[1], (6,), 3 * 5 * 5),
        "w2": u(ks[2], (16, 6, 5, 5), 6 * 5 * 5),
        "b2": u(ks[3], (16,), 6 * 5 * 5),
        "wp": u(ks[4], (L, 16 * 5 * 5, 10), 16 * 5 * 5),
        "bp": u(ks[5], (10,), 16 * 5 * 5),
    }


if __name__ == "__main__":
    L = 4
    key = jax.random.PRNGKey(0)
    k_x, k_p = jax.random.split(key)
    # 32x32 inputs are what the module implies: two (5x5 conv + 2x2 pool)
    # stages must yield the 16*5*5 flatten.
    x = jax.random.normal(k_x, (2, 3, 32, 32), jnp.float32)
    params = init_params(k_p, L)

    fwd = jax.jit(functools.partial(polycnn_forward, L=L))
    out = jax.block_until_ready(fwd(x, params))
    assert out.shape == (2, 10) and out.dtype == jnp.float32

    ref = jax.block_until_ready(
        jax.jit(functools.partial(polycnn_reference, L=L))(x, params))
    max_err = float(jnp.max(jnp.abs(out - ref)))
    assert max_err < 1e-2, f"Pallas forward mismatches XLA reference: {max_err}"
    print("KERNEL_OK")
</pallas_src>

<mosaic_0001>
module attributes {stable_mosaic.version = 11 : i64} {
  func.func @_conv_relu_pool_kernel(%arg0: i32, %arg1: memref<1x80x1024xf32, #tpu.memory_space<vmem>>, %arg2: memref<8x80xf32, #tpu.memory_space<vmem>>, %arg3: memref<8x128xf32, #tpu.memory_space<vmem>>, %arg4: memref<1x8x256xf32, #tpu.memory_space<vmem>>) attributes {dimension_semantics = [#tpu.dimension_semantics<parallel>], iteration_bounds = array<i64: 2>, scalar_prefetch = 0 : i64, scratch_operands = 0 : i64, tpu.core_type = #tpu.core_type<tc>, window_params = [{transform_indices = @transform_0, window_bounds = array<i64: 1, 80, 1024>}, {pipeline_mode = #tpu.pipeline_mode<synchronous>, transform_indices = @transform_1, window_bounds = array<i64: 8, 80>}, {pipeline_mode = #tpu.pipeline_mode<synchronous>, transform_indices = @transform_2, window_bounds = array<i64: 8, 128>}, {transform_indices = @transform_3, window_bounds = array<i64: 1, 8, 256>}]} {
    %c0 = arith.constant 0 : index
    %c0_0 = arith.constant 0 : index
    %0 = vector.load %arg2[%c0, %c0_0] : memref<8x80xf32, #tpu.memory_space<vmem>>, vector<8x80xf32>
    %c0_1 = arith.constant 0 : index
    %c0_2 = arith.constant 0 : index
    %c0_3 = arith.constant 0 : index
    %1 = vector.load %arg1[%c0_1, %c0_2, %c0_3] : memref<1x80x1024xf32, #tpu.memory_space<vmem>>, vector<1x80x1024xf32>
    %2 = vector.shape_cast %1 : vector<1x80x1024xf32> to vector<80x1024xf32>
    %cst = arith.constant dense<0.000000e+00> : vector<8x1024xf32>
    %3 = tpu.matmul %0, %2, %cst {dimension_numbers = #tpu.dot_dimension_numbers<[1], [0], [0], [1], [0, 0, 1, 1], [], []>} : vector<8x80xf32>, vector<80x1024xf32>, vector<8x1024xf32> -> vector<8x1024xf32>
    %4 = vector.extract_strided_slice %3 {offsets = [0, 0], sizes = [8, 256], strides = [1, 1]} : vector<8x1024xf32> to vector<8x256xf32>
    %5 = vector.extract_strided_slice %3 {offsets = [0, 256], sizes = [8, 256], strides = [1, 1]} : vector<8x1024xf32> to vector<8x256xf32>
    %6 = arith.maximumf %4, %5 : vector<8x256xf32>
    %7 = vector.extract_strided_slice %3 {offsets = [0, 512], sizes = [8, 256], strides = [1, 1]} : vector<8x1024xf32> to vector<8x256xf32>
    %8 = vector.extract_strided_slice %3 {offsets = [0, 768], sizes = [8, 256], strides = [1, 1]} : vector<8x1024xf32> to vector<8x256xf32>
    %9 = arith.maximumf %7, %8 : vector<8x256xf32>
    %10 = arith.maximumf %6, %9 : vector<8x256xf32>
    %c0_4 = arith.constant 0 : index
    %c0_5 = arith.constant 0 : index
    %11 = vector.load %arg3[%c0_4, %c0_5] : memref<8x128xf32, #tpu.memory_space<vmem>>, vector<8x128xf32>
    %12 = vector.extract_strided_slice %11 {offsets = [0, 0], sizes = [8, 1], strides = [1, 1]} : vector<8x128xf32> to vector<8x1xf32>
    %13 = vector.broadcast %12 : vector<8x1xf32> to vector<8x256xf32>
    %14 = arith.addf %10, %13 : vector<8x256xf32>
    %cst_6 = arith.constant 0.000000e+00 : f32
    %15 = vector.broadcast %cst_6 : f32 to vector<8x256xf32>
    %16 = arith.maximumf %14, %15 : vector<8x256xf32>
    %c0_7 = arith.constant 0 : index
    %c0_8 = arith.constant 0 : index
    %c0_9 = arith.constant 0 : index
    %17 = vector.load %arg4[%c0_7, %c0_8, %c0_9] : memref<1x8x256xf32, #tpu.memory_space<vmem>>, vector<1x8x256xf32>
    %18 = vector.shape_cast %17 : vector<1x8x256xf32> to vector<8x256xf32>
    %19 = vector.shape_cast %16 : vector<8x256xf32> to vector<1x8x256xf32>
    tpu.vector_store %arg4[%c0_7, %c0_8, %c0_9], %19 {strides = array<i32>} : memref<1x8x256xf32, #tpu.memory_space<vmem>>, vector<1x8x256xf32>,
    return
  }
  func.func @transform_0(%arg0: i32) -> (i32, i32, i32) {
    %c0_i32 = arith.constant 0 : i32
    %c0_i32_0 = arith.constant 0 : i32
    %c0_i32_1 = arith.constant 0 : i32
    return %arg0, %c0_i32, %c0_i32_0 : i32, i32, i32
  }
  func.func @transform_1(%arg0: i32) -> (i32, i32) {
    %c0_i32 = arith.constant 0 : i32
    %c0_i32_0 = arith.constant 0 : i32
    %c0_i32_1 = arith.constant 0 : i32
    return %c0_i32, %c0_i32_0 : i32, i32
  }
  func.func @transform_2(%arg0: i32) -> (i32, i32) {
    %c0_i32 = arith.constant 0 : i32
    %c0_i32_0 = arith.constant 0 : i32
    %c0_i32_1 = arith.constant 0 : i32
    return %c0_i32, %c0_i32_0 : i32, i32
  }
  func.func @transform_3(%arg0: i32) -> (i32, i32, i32) {
    %c0_i32 = arith.constant 0 : i32
    %c0_i32_0 = arith.constant 0 : i32
    %c0_i32_1 = arith.constant 0 : i32
    return %arg0, %c0_i32, %c0_i32_0 : i32, i32, i32
  }
}

module attributes {stable_mosaic.version = 11 : i64} {
  func.func @_conv_relu_pool_kernel(%arg0: i32, %arg1: memref<1x200x512xf32, #tpu.memory_space<vmem>>, %arg2: memref<16x200xf32, #tpu.memory_space<vmem>>, %arg3: memref<16x128xf32, #tpu.memory_space<vmem>>, %arg4: memref<1x16x128xf32, #tpu.memory_space<vmem>>) attributes {dimension_semantics = [#tpu.dimension_semantics<parallel>], iteration_bounds = array<i64: 2>, scalar_prefetch = 0 : i64, scratch_operands = 0 : i64, tpu.core_type = #tpu.core_type<tc>, window_params = [{transform_indices = @transform_0, window_bounds = array<i64: 1, 200, 512>}, {pipeline_mode = #tpu.pipeline_mode<synchronous>, transform_indices = @transform_1, window_bounds = array<i64: 16, 200>}, {pipeline_mode = #tpu.pipeline_mode<synchronous>, transform_indices = @transform_2, window_bounds = array<i64: 16, 128>}, {transform_indices = @transform_3, window_bounds = array<i64: 1, 16, 128>}]} {
    %c0 = arith.constant 0 : index
    %c0_0 = arith.constant 0 : index
    %0 = vector.load %arg2[%c0, %c0_0] : memref<16x200xf32, #tpu.memory_space<vmem>>, vector<16x200xf32>
    %c0_1 = arith.constant 0 : index
    %c0_2 = arith.constant 0 : index
    %c0_3 = arith.constant 0 : index
    %1 = vector.load %arg1[%c0_1, %c0_2, %c0_3] : memref<1x200x512xf32, #tpu.memory_space<vmem>>, vector<1x200x512xf32>
    %2 = vector.shape_cast %1 : vector<1x200x512xf32> to vector<200x512xf32>
    %cst = arith.constant dense<0.000000e+00> : vector<16x512xf32>
    %3 = tpu.matmul %0, %2, %cst {dimension_numbers = #tpu.dot_dimension_numbers<[1], [0], [0], [1], [0, 0, 1, 1], [], []>} : vector<16x200xf32>, vector<200x512xf32>, vector<16x512xf32> -> vector<16x512xf32>
    %4 = vector.extract_strided_slice %3 {offsets = [0, 0], sizes = [16, 128], strides = [1, 1]} : vector<16x512xf32> to vector<16x128xf32>
    %5 = vector.extract_strided_slice %3 {offsets = [0, 128], sizes = [16, 128], strides = [1, 1]} : vector<16x512xf32> to vector<16x128xf32>
    %6 = arith.maximumf %4, %5 : vector<16x128xf32>
    %7 = vector.extract_strided_slice %3 {offsets = [0, 256], sizes = [16, 128], strides = [1, 1]} : vector<16x512xf32> to vector<16x128xf32>
    %8 = vector.extract_strided_slice %3 {offsets = [0, 384], sizes = [16, 128], strides = [1, 1]} : vector<16x512xf32> to vector<16x128xf32>
    %9 = arith.maximumf %7, %8 : vector<16x128xf32>
    %10 = arith.maximumf %6, %9 : vector<16x128xf32>
    %c0_4 = arith.constant 0 : index
    %c0_5 = arith.constant 0 : index
    %11 = vector.load %arg3[%c0_4, %c0_5] : memref<16x128xf32, #tpu.memory_space<vmem>>, vector<16x128xf32>
    %12 = vector.extract_strided_slice %11 {offsets = [0, 0], sizes = [16, 1], strides = [1, 1]} : vector<16x128xf32> to vector<16x1xf32>
    %13 = vector.broadcast %12 : vector<16x1xf32> to vector<16x128xf32>
    %14 = arith.addf %10, %13 : vector<16x128xf32>
    %cst_6 = arith.constant 0.000000e+00 : f32
    %15 = vector.broadcast %cst_6 : f32 to vector<16x128xf32>
    %16 = arith.maximumf %14, %15 : vector<16x128xf32>
    %c0_7 = arith.constant 0 : index
    %c0_8 = arith.constant 0 : index
    %c0_9 = arith.constant 0 : index
    %17 = vector.load %arg4[%c0_7, %c0_8, %c0_9] : memref<1x16x128xf32, #tpu.memory_space<vmem>>, vector<1x16x128xf32>
    %18 = vector.shape_cast %17 : vector<1x16x128xf32> to vector<16x128xf32>
    %19 = vector.shape_cast %16 : vector<16x128xf32> to vector<1x16x128xf32>
    tpu.vector_store %arg4[%c0_7, %c0_8, %c0_9], %19 {strides = array<i32>} : memref<1x16x128xf32, #tpu.memory_space<vmem>>, vector<1x16x128xf32>,
    return
  }
  func.func @transform_0(%arg0: i32) -> (i32, i32, i32) {
    %c0_i32 = arith.constant 0 : i32
    %c0_i32_0 = arith.constant 0 : i32
    %c0_i32_1 = arith.constant 0 : i32
    return %arg0, %c0_i32, %c0_i32_0 : i32, i32, i32
  }
  func.func @transform_1(%arg0: i32) -> (i32, i32) {
    %c0_i32 = arith.constant 0 : i32
    %c0_i32_0 = arith.constant 0 : i32
    %c0_i32_1 = arith.constant 0 : i32
    return %c0_i32, %c0_i32_0 : i32, i32
  }
  func.func @transform_2(%arg0: i32) -> (i32, i32) {
    %c0_i32 = arith.constant 0 : i32
    %c0_i32_0 = arith.constant 0 : i32
    %c0_i32_1 = arith.constant 0 : i32
    return %c0_i32, %c0_i32_0 : i32, i32
  }
  func.func @transform_3(%arg0: i32) -> (i32, i32, i32) {
    %c0_i32 = arith.constant 0 : i32
    %c0_i32_0 = arith.constant 0 : i32
    %c0_i32_1 = arith.constant 0 : i32
    return %arg0, %c0_i32, %c0_i32_0 : i32, i32, i32
  }
}

module attributes {stable_mosaic.version = 11 : i64} {
  func.func @_poly_kernel(%arg0: memref<2x512xf32, #tpu.memory_space<vmem>>, %arg1: memref<2048x128xf32, #tpu.memory_space<vmem>>, %arg2: memref<1x128xf32, #tpu.memory_space<vmem>>, %arg3: memref<2x128xf32, #tpu.memory_space<vmem>>) attributes {dimension_semantics = [], scalar_prefetch = 0 : i64, scratch_operands = 0 : i64, tpu.core_type = #tpu.core_type<tc>} {
    %c0 = arith.constant 0 : index
    %c0_0 = arith.constant 0 : index
    %0 = vector.load %arg0[%c0, %c0_0] : memref<2x512xf32, #tpu.memory_space<vmem>>, vector<2x512xf32>
    %c0_1 = arith.constant 0 : index
    %c0_2 = arith.constant 0 : index
    %1 = vector.load %arg1[%c0_1, %c0_2] : memref<2048x128xf32, #tpu.memory_space<vmem>>, vector<512x128xf32>
    %cst = arith.constant dense<0.000000e+00> : vector<2x128xf32>
    %2 = tpu.matmul %0, %1, %cst {dimension_numbers = #tpu.dot_dimension_numbers<[1], [0], [0], [1], [0, 0, 1, 1], [], []>} : vector<2x512xf32>, vector<512x128xf32>, vector<2x128xf32> -> vector<2x128xf32>
    %3 = arith.mulf %0, %0 : vector<2x512xf32>
    %c512 = arith.constant 512 : index
    %c0_3 = arith.constant 0 : index
    %4 = vector.load %arg1[%c512, %c0_3] : memref<2048x128xf32, #tpu.memory_space<vmem>>, vector<512x128xf32>
    %cst_4 = arith.constant dense<0.000000e+00> : vector<2x128xf32>
    %5 = tpu.matmul %3, %4, %cst_4 {dimension_numbers = #tpu.dot_dimension_numbers<[1], [0], [0], [1], [0, 0, 1, 1], [], []>} : vector<2x512xf32>, vector<512x128xf32>, vector<2x128xf32> -> vector<2x128xf32>
    %6 = arith.addf %2, %5 : vector<2x128xf32>
    %7 = arith.mulf %3, %0 : vector<2x512xf32>
    %c1024 = arith.constant 1024 : index
    %c0_5 = arith.constant 0 : index
    %8 = vector.load %arg1[%c1024, %c0_5] : memref<2048x128xf32, #tpu.memory_space<vmem>>, vector<512x128xf32>
    %cst_6 = arith.constant dense<0.000000e+00> : vector<2x128xf32>
    %9 = tpu.matmul %7, %8, %cst_6 {dimension_numbers = #tpu.dot_dimension_numbers<[1], [0], [0], [1], [0, 0, 1, 1], [], []>} : vector<2x512xf32>, vector<512x128xf32>, vector<2x128xf32> -> vector<2x128xf32>
    %10 = arith.addf %6, %9 : vector<2x128xf32>
    %11 = arith.mulf %7, %0 : vector<2x512xf32>
    %c1536 = arith.constant 1536 : index
    %c0_7 = arith.constant 0 : index
    %12 = vector.load %arg1[%c1536, %c0_7] : memref<2048x128xf32, #tpu.memory_space<vmem>>, vector<512x128xf32>
    %cst_8 = arith.constant dense<0.000000e+00> : vector<2x128xf32>
    %13 = tpu.matmul %11, %12, %cst_8 {dimension_numbers = #tpu.dot_dimension_numbers<[1], [0], [0], [1], [0, 0, 1, 1], [], []>} : vector<2x512xf32>, vector<512x128xf32>, vector<2x128xf32> -> vector<2x128xf32>
    %14 = arith.addf %10, %13 : vector<2x128xf32>
    %c0_9 = arith.constant 0 : index
    %c0_10 = arith.constant 0 : index
    %15 = vector.load %arg2[%c0_9, %c0_10] : memref<1x128xf32, #tpu.memory_space<vmem>>, vector<1x128xf32>
    %16 = vector.broadcast %15 : vector<1x128xf32> to vector<2x128xf32>
    %17 = arith.addf %14, %16 : vector<2x128xf32>
    %c0_11 = arith.constant 0 : index
    %c0_12 = arith.constant 0 : index
    %18 = vector.load %arg3[%c0_11, %c0_12] : memref<2x128xf32, #tpu.memory_space<vmem>>, vector<2x128xf32>
    tpu.vector_store %arg3[%c0_11, %c0_12], %17 {strides = array<i32>} : memref<2x128xf32, #tpu.memory_space<vmem>>, vector<2x128xf32>,
    return
  }
}

</mosaic_0001>

<bundles_post_ra>
// kernel: polycnn_forward.3
= control target key start
LH: loop header
LB: loop body
LE: loop exit
PB: predicated region body
PF: predicated region fallthrough
CT: control target
= control target key end

     0   :  { %s750_s12 = smov 0   ;;  %s873_s0 = inlined_call_operand.vmem [shape: f32[2,80,1024], index: 0, kind: input, shape index: {}]   ;;  %s874_s1 = inlined_call_operand.vmem [shape: f32[8,80], index: 1, kind: input, shape index: {}]   ;;  %s875_s2 = inlined_call_operand.vmem [shape: f32[8,128], index: 2, kind: input, shape index: {}]   ;;  %s876_s3 = inlined_call_operand.vmem [shape: f32[2,8,256], index: 3, kind: output, shape index: {}]  }
   0x1 LB: > { %s613_s13 = sadd.s32 4294967295, %s726_s12   ;;  %p617_p0 = scmp.ge.s32.totalorder %s726_s12, 1  ;;  %s726_s12 = sphi %s750_s12, %s13_s12  }
   0x2   : > { %p137_p1 = scmp.lt.s32.totalorder %s726_s12, 3 }
   0x4   : > { %p138_p2 = pnand %p617_p0, %p137_p1 }
   0x5   : > { %p161_p3 = scmp.lt.s32.totalorder (!%p138_p2), %s613_s13, 1  ;;  %v546_v0 = vld [vmem:[%s875_s2] sm:$0xff] (!%p138_p2)  ;;  %v728_v1 = vmov (!%p138_p2), 0.0   ;;  %v729_v2 = vmov (!%p138_p2), 0   ;;  %vm252_vm0 = vcmask (!%p138_p2), 654336  }
   0x6   : > { %141 = sbr.rel (%p138_p2) target bundleno = 284 (0x11c), region = 32  ;;  %320 = vmatprep.mubr.f32.mxu0 (!%p138_p2), %v728_v1  ;;  %391 = vmatprep.mubr.f32.mxu1 (!%p138_p2), %v728_v1 }
   0x7   : > { %719 = vset.pattern.permute.xlu0 (!%p138_p2), %v729_v2 }
   0x8   : > { %549 = vperm.xlu0 (!%p138_p2), %719, %v546_v0  }
   0xd   : > { %s878_s13 = smov (!%p161_p3, %s613_s13), 1 }
   0xe   : > { %s708_s16 = smul.u32 640, %s878_s13  ;;  %s627_s22 = sshll.u32 %s878_s13, 4 }
   0xf   : > { %s170_s25 = scalar_lea.vmem %s876_s3, %s627_s22 }
  0x10   : > { %s769_s19 = scalar_lea.vmem %s873_s0, %s708_s16 }
  0x11   : > { %v173_v3 = vld [vmem:[%s769_s19 + $0x8] sm:$0xff]  ;;  %v175_v5 = vld [vmem:[%s769_s19 + $0x18] sm:$0xff]  ;;  %v172_v8 = vld [vmem:[%s769_s19] sm:$0xff] }
  0x12   : > { %v181_v4 = vld [vmem:[%s769_s19 + $0x48] sm:$0xff]  ;;  %v183_v7 = vld [vmem:[%s769_s19 + $0x58] sm:$0xff]  ;;  %v180_v9 = vld [vmem:[%s769_s19 + $0x40] sm:$0xff] }
  0x13   : > { %v628_v6 = vpack.c.bf16 %v181_v4, %v173_v3  ;;  %v648_v10 = vpack.c.bf16 %v183_v7, %v175_v5  ;;  %v630_v11 = vpack.c.bf16 %v180_v9, %v172_v8  ;;  %v174_v12 = vld [vmem:[%s769_s19 + $0x10] sm:$0xff]  ;;  %v189_v14 = vld [vmem:[%s769_s19 + $0x88] sm:$0xff]  ;;  %v191_v17 = vld [vmem:[%s769_s19 + $0x98] sm:$0xff] }
  0x14   : > { %v182_v13 = vld [vmem:[%s769_s19 + $0x50] sm:$0xff]  ;;  %v197_v16 = vld [vmem:[%s769_s19 + $0xc8] sm:$0xff]  ;;  %v199_v18 = vld [vmem:[%s769_s19 + $0xd8] sm:$0xff] }
  0x15   : > { %629 = vmatprep.subr.bf16.mxu0 %v628_v6  ;;  %v650_v15 = vpack.c.bf16 %v182_v13, %v174_v12  ;;  %649 = vmatprep.subr.bf16.mxu1 %v648_v10  ;;  %v632_v19 = vpack.c.bf16 %v197_v16, %v189_v14  ;;  %v652_v20 = vpack.c.bf16 %v199_v18, %v191_v17  ;;  %v188_v21 = vld [vmem:[%s769_s19 + $0x80] sm:$0xff]  ;;  %v190_v23 = vld [vmem:[%s769_s19 + $0x90] sm:$0xff]  ;;  %v205_v26 = vld [vmem:[%s769_s19 + $0x108] sm:$0xff] }
  0x16   : > { %631 = vmatpush1.bf16.msra.mxu0 %v630_v11  ;;  %v196_v22 = vld [vmem:[%s769_s19 + $0xc0] sm:$0xff]  ;;  %v198_v25 = vld [vmem:[%s769_s19 + $0xd0] sm:$0xff]  ;;  %v213_v27 = vld [vmem:[%s769_s19 + $0x148] sm:$0xff] }
  0x17   : > { %651 = vmatpush1.bf16.msra.mxu1 %v650_v15  ;;  %v634_v24 = vpack.c.bf16 %v196_v22, %v188_v21  ;;  %633 = vmatprep.subr.bf16.mxu0 %v632_v19  ;;  %v654_v28 = vpack.c.bf16 %v198_v25, %v190_v23  ;;  %v636_v29 = vpack.c.bf16 %v213_v27, %v205_v26  ;;  %v207_v30 = vld [vmem:[%s769_s19 + $0x118] sm:$0xff]  ;;  %v204_v32 = vld [vmem:[%s769_s19 + $0x100] sm:$0xff]  ;;  %v206_v35 = vld [vmem:[%s769_s19 + $0x110] sm:$0xff] }
  0x18   : > { %653 = vmatprep.subr.bf16.mxu1 %v652_v20  ;;  %v215_v31 = vld [vmem:[%s769_s19 + $0x158] sm:$0xff]  ;;  %v212_v34 = vld [vmem:[%s769_s19 + $0x140] sm:$0xff]  ;;  %v214_v36 = vld [vmem:[%s769_s19 + $0x150] sm:$0xff] }
  0x19   : > { %v656_v33 = vpack.c.bf16 %v215_v31, %v207_v30  ;;  %v638_v37 = vpack.c.bf16 %v212_v34, %v204_v32  ;;  %v221_v38 = vld [vmem:[%s769_s19 + $0x188] sm:$0xff]  ;;  %v223_v40 = vld [vmem:[%s769_s19 + $0x198] sm:$0xff]  ;;  %v658_v41 = vpack.c.bf16 %v214_v36, %v206_v35  ;;  %v220_v44 = vld [vmem:[%s769_s19 + $0x180] sm:$0xff] }
  0x1a   : > { %635 = vmatpush1.bf16.msra.mxu0 %v634_v24  ;;  %v229_v39 = vld [vmem:[%s769_s19 + $0x1c8] sm:$0xff]  ;;  %v231_v43 = vld [vmem:[%s769_s19 + $0x1d8] sm:$0xff]  ;;  %v228_v45 = vld [vmem:[%s769_s19 + $0x1c0] sm:$0xff] }
  0x1b   : > { %655 = vmatpush1.bf16.msra.mxu1 %v654_v28  ;;  %637 = vmatprep.subr.bf16.mxu0 %v636_v29  ;;  %v640_v42 = vpack.c.bf16 %v229_v39, %v221_v38  ;;  %v660_v46 = vpack.c.bf16 %v231_v43, %v223_v40  ;;  %v222_v47 = vld [vmem:[%s769_s19 + $0x190] sm:$0xff]  ;;  %v237_v49 = vld [vmem:[%s769_s19 + $0x208] sm:$0xff]  ;;  %v239_v51 = vld [vmem:[%s769_s19 + $0x218] sm:$0xff]  ;;  %v642_v53 = vpack.c.bf16 %v228_v45, %v220_v44 }
  0x1c   : > { %657 = vmatprep.subr.bf16.mxu1 %v656_v33  ;;  %v230_v48 = vld [vmem:[%s769_s19 + $0x1d0] sm:$0xff]  ;;  %v245_v50 = vld [vmem:[%s769_s19 + $0x248] sm:$0xff]  ;;  %v247_v52 = vld [vmem:[%s769_s19 + $0x258] sm:$0xff] }
  0x1d   : > { %v662_v54 = vpack.c.bf16 %v230_v48, %v222_v47  ;;  %v644_v55 = vpack.c.bf16 %v245_v50, %v237_v49  ;;  %v236_v56 = vld [vmem:[%s769_s19 + $0x200] sm:$0xff]  ;;  %v238_v58 = vld [vmem:[%s769_s19 + $0x210] sm:$0xff]  ;;  %v664_v59 = vpack.c.bf16 %v247_v52, %v239_v51  ;;  %v177_v61 = vld [vmem:[%s769_s19 + $0x28] sm:$0xff] }
  0x1e   : > { %639 = vmatpush1.bf16.msra.mxu0 %v638_v37  ;;  %v244_v57 = vld [vmem:[%s769_s19 + $0x240] sm:$0xff]  ;;  %v246_v60 = vld [vmem:[%s769_s19 + $0x250] sm:$0xff]  ;;  %v185_v62 = vld [vmem:[%s769_s19 + $0x68] sm:$0xff] }
  0x1f   : > { %659 = vmatpush1.bf16.msra.mxu1 %v658_v41  ;;  %641 = vmatprep.subr.bf16.mxu0 %v640_v42  ;;  %v179_v63 = vld [vmem:[%s769_s19 + $0x38] sm:$0xff]  ;;  %v646_v2 = vpack.c.bf16 %v244_v57, %v236_v56  ;;  %v666_v3 = vpack.c.bf16 %v246_v60, %v238_v58  ;;  %v668_v4 = vpack.c.bf16 %v185_v62, %v177_v61  ;;  %v176_v5 = vld [vmem:[%s769_s19 + $0x20] sm:$0xff]  ;;  %v178_v7 = vld [vmem:[%s769_s19 + $0x30] sm:$0xff] }
  0x20   : > { %661 = vmatprep.subr.bf16.mxu1 %v660_v46  ;;  %v187_v0 = vld [vmem:[%s769_s19 + $0x78] sm:$0xff]  ;;  %v184_v6 = vld [vmem:[%s769_s19 + $0x60] sm:$0xff]  ;;  %v186_v9 = vld [vmem:[%s769_s19 + $0x70] sm:$0xff] }
  0x21   : > { %v688_v8 = vpack.c.bf16 %v187_v0, %v179_v63  ;;  %v193_v10 = vld [vmem:[%s769_s19 + $0xa8] sm:$0xff]  ;;  %v195_v12 = vld [vmem:[%s769_s19 + $0xb8] sm:$0xff]  ;;  %v826_v14 = vld [vmem:[%s874_s1] sm:$0xff]  ;;  %v670_v15 = vpack.c.bf16 %v184_v6, %v176_v5  ;;  %v690_v16 = vpack.c.bf16 %v186_v9, %v178_v7 }
  0x22   : > { %643 = vmatpush1.bf16.msra.mxu0 %v642_v53  ;;  %v201_v11 = vld [vmem:[%s769_s19 + $0xe8] sm:$0xff]  ;;  %v203_v13 = vld [vmem:[%s769_s19 + $0xf8] sm:$0xff]  ;;  %v192_v18 = vld [vmem:[%s769_s19 + $0xa0] sm:$0xff] }
  0x23   : > { %663 = vmatpush1.bf16.msra.mxu1 %v662_v54  ;;  %645 = vmatprep.subr.bf16.mxu0 %v644_v55  ;;  %v672_v17 = vpack.c.bf16 %v201_v11, %v193_v10  ;;  %v200_v19 = vld [vmem:[%s769_s19 + $0xe0] sm:$0xff]  ;;  %v194_v20 = vld [vmem:[%s769_s19 + $0xb0] sm:$0xff]  ;;  %v692_v21 = vpack.c.bf16 %v203_v13, %v195_v12  ;;  %v209_v23 = vld [vmem:[%s769_s19 + $0x128] sm:$0xff] }
  0x24   : > { %665 = vmatprep.subr.bf16.mxu1 %v664_v59  ;;  %v202_v22 = vld [vmem:[%s769_s19 + $0xf0] sm:$0xff]  ;;  %v217_v24 = vld [vmem:[%s769_s19 + $0x168] sm:$0xff]  ;;  %v211_v25 = vld [vmem:[%s769_s19 + $0x138] sm:$0xff]  ;;  %v674_v27 = vpack.c.bf16 %v200_v19, %v192_v18 }
  0x25   : > { %v219_v26 = vld [vmem:[%s769_s19 + $0x178] sm:$0xff]  ;;  %v694_v28 = vpack.c.bf16 %v202_v22, %v194_v20  ;;  %v676_v29 = vpack.c.bf16 %v217_v24, %v209_v23  ;;  %v208_v30 = vld [vmem:[%s769_s19 + $0x120] sm:$0xff]  ;;  %v210_v32 = vld [vmem:[%s769_s19 + $0x130] sm:$0xff] }
  0x26   : > { %647 = vmatpush1.bf16.msra.mxu0 %v646_v2  ;;  %v216_v31 = vld [vmem:[%s769_s19 + $0x160] sm:$0xff]  ;;  %v696_v33 = vpack.c.bf16 %v219_v26, %v211_v25  ;;  %v218_v34 = vld [vmem:[%s769_s19 + $0x170] sm:$0xff]  ;;  %v225_v35 = vld [vmem:[%s769_s19 + $0x1a8] sm:$0xff] }
  0x27   : > { %667 = vmatpush1.bf16.msra.mxu1 %v666_v3  ;;  %669 = vmatprep.subr.bf16.mxu0 %v668_v4  ;;  %v233_v36 = vld [vmem:[%s769_s19 + $0x1e8] sm:$0xff]  ;;  %v227_v37 = vld [vmem:[%s769_s19 + $0x1b8] sm:$0xff]  ;;  %v678_v39 = vpack.c.bf16 %v216_v31, %v208_v30  ;;  %v698_v40 = vpack.c.bf16 %v218_v34, %v210_v32  ;;  %v224_v42 = vld [vmem:[%s769_s19 + $0x1a0] sm:$0xff] }
  0x28   : > { %689 = vmatprep.subr.bf16.mxu1 %v688_v8  ;;  %v235_v38 = vld [vmem:[%s769_s19 + $0x1f8] sm:$0xff]  ;;  %v680_v41 = vpack.c.bf16 %v233_v36, %v225_v35  ;;  %v232_v43 = vld [vmem:[%s769_s19 + $0x1e0] sm:$0xff]  ;;  %v226_v44 = vld [vmem:[%s769_s19 + $0x1b0] sm:$0xff] }
  0x29   : > { %621 = vmatmul.mubr.msk.f32.vlgmr.msra.gmra.mrb[0].mxu0 %vm252_vm0, %v826_v14  ;;  %v700_v45 = vpack.c.bf16 %v235_v38, %v227_v37  ;;  %v234_v46 = vld [vmem:[%s769_s19 + $0x1f0] sm:$0xff]  ;;  %v241_v47 = vld [vmem:[%s769_s19 + $0x228] sm:$0xff]  ;;  %v251_v49 = vld [vmem:[%s769_s19 + $0x278] sm:$0xff]  ;;  %v682_v50 = vpack.c.bf16 %v232_v43, %v224_v42 }
  0x2a   : > { %622 = vmatmul.mubr.msk.f32.vlgmr.msra.gmra.mrb[0].mxu1 %vm252_vm0, %v826_v14  ;;  %671 = vmatpush1.bf16.msra.mxu0 %v670_v15  ;;  %v249_v48 = vld [vmem:[%s769_s19 + $0x268] sm:$0xff]  ;;  %v702_v51 = vpack.c.bf16 %v234_v46, %v226_v44  ;;  %v240_v53 = vld [vmem:[%s769_s19 + $0x220] sm:$0xff]  ;;  %v242_v56 = vld [vmem:[%s769_s19 + $0x230] sm:$0xff] }
  0x2b   : > { %691 = vmatpush1.bf16.msra.mxu1 %v690_v16  ;;  %673 = vmatprep.subr.bf16.mxu0 %v672_v17  ;;  %v684_v52 = vpack.c.bf16 %v249_v48, %v241_v47  ;;  %v248_v54 = vld [vmem:[%s769_s19 + $0x260] sm:$0xff]  ;;  %v250_v57 = vld [vmem:[%s769_s19 + $0x270] sm:$0xff] }
  0x2c   : > { %693 = vmatprep.subr.bf16.mxu1 %v692_v21  ;;  %462 = vmatprep.mubr.f32.mxu0 %v728_v1  ;;  %v686_v58 = vpack.c.bf16 %v248_v54, %v240_v53  ;;  %v706_v59 = vpack.c.bf16 %v250_v57, %v242_v56 }
  0x2d   : > { %533 = vmatprep.mubr.f32.mxu1 %v728_v1  ;;  %v243_v1 = vld [vmem:[%s769_s19 + $0x238] sm:$0xff] }
  0x2e   : > { %675 = vmatpush1.bf16.msra.mxu0 %v674_v27  ;;  %v704_v55 = vpack.c.bf16 %v251_v49, %v243_v1 }
  0x2f   : > { %695 = vmatpush1.bf16.msra.mxu1 %v694_v28  ;;  %677 = vmatprep.subr.bf16.mxu0 %v676_v29 }
  0x30   : > { %697 = vmatprep.subr.bf16.mxu1 %v696_v33 }
  0x32   : > { %679 = vmatpush1.bf16.msra.mxu0 %v678_v39 }
  0x33   : > { %699 = vmatpush1.bf16.msra.mxu1 %v698_v40  ;;  %681 = vmatprep.subr.bf16.mxu0 %v680_v41 }
  0x34   : > { %701 = vmatprep.subr.bf16.mxu1 %v700_v45 }
  0x36   : > { %683 = vmatpush1.bf16.msra.mxu0 %v682_v50 }
  0x37   : > { %703 = vmatpush1.bf16.msra.mxu1 %v702_v51  ;;  %685 = vmatprep.subr.bf16.mxu0 %v684_v52 }
  0x38   : > { %705 = vmatprep.subr.bf16.mxu1 %v704_v55 }
  0x3a   : > { %687 = vmatpush1.bf16.msra.mxu0 %v686_v58 }
  0x3b   : > { %707 = vmatpush1.bf16.msra.mxu1 %v706_v59 }
  0x3d   : > { %623 = vmatmul.mubr.msk.f32.vlgmr.msra.gmra.mrb[2].mxu0 %vm252_vm0, %v826_v14 }
  0x3e   : > { %624 = vmatmul.mubr.msk.f32.vlgmr.msra.gmra.mrb[2].mxu1 %vm252_vm0, %v826_v14 }
  0x87   : > { %v550_v9 = vpop.permute.xlu0 %549 }
  0xfc   : > { %v322_v60 = vpop.f32.mrb[0].mxu0 }
  0xfd   : > { %v393_v61 = vpop.f32.mrb[0].mxu1  ;;  %v324_v62 = vpop.f32.mrb[1].mxu0 }
  0xfe   : > { %v540_v63 = vmax.f32 %v322_v60, %v393_v61  ;;  %v395_v0 = vpop.f32.mrb[1].mxu1 }
  0xff   : > { %v541_v2 = vmax.f32 %v324_v62, %v395_v0 }
 0x110   : > { %v464_v3 = vpop.f32.mrb[2].mxu0 }
 0x111   : > { %v535_v4 = vpop.f32.mrb[2].mxu1  ;;  %v466_v5 = vpop.f32.mrb[3].mxu0 }
 0x112   : > { %v542_v6 = vmax.f32 %v464_v3, %v535_v4  ;;  %v537_v7 = vpop.f32.mrb[3].mxu1 }
 0x113   : > { %v543_v8 = vmax.f32 %v466_v5, %v537_v7 }
 0x114   : > { %v544_v10 = vmax.f32 %v540_v63, %v542_v6 }
 0x115   : > { %v545_v11 = vmax.f32 %v541_v2, %v543_v8 }
 0x116   : > { %v552_v12 = vadd.f32 %v550_v9, %v544_v10 }
 0x117   : > { %v553_v13 = vadd.f32 %v550_v9, %v545_v11 }
 0x118   : > { %v554_v14 = vmax.f32 %v552_v12, 0.0 }
 0x119   : > { %v555_v15 = vmax.f32 %v553_v13, 0.0 }
 0x11a   : > { %556 = vst [vmem:[%s170_s25] sm:$0xff] %v554_v14 }
 0x11b   : > { %557 = vst [vmem:[%s170_s25 + $0x8] sm:$0xff] %v555_v15 }
 0x11c PF: > { %s13_s12 = sadd.s32 1, %s726_s12  }
 0x11d   : > { %p10_p4 = scmp.ge.s32.totalorder %s13_s12, 4  }
 0x11f   :  { %12 = sbr.rel (!%p10_p4) target bundleno = 1 (0x1), region = 62 }

// kernel: polycnn_forward.4
= control target key start
LH: loop header
LB: loop body
LE: loop exit
PB: predicated region body
PF: predicated region fallthrough
CT: control target
= control target key end

     0   :  { %s666_s12 = smov 0   ;;  %s811_s0 = inlined_call_operand.vmem [shape: f32[2,200,512], index: 0, kind: input, shape index: {}]   ;;  %s812_s1 = inlined_call_operand.vmem [shape: f32[16,200], index: 1, kind: input, shape index: {}]   ;;  %s813_s2 = inlined_call_operand.vmem [shape: f32[16,128], index: 2, kind: input, shape index: {}]   ;;  %s814_s3 = inlined_call_operand.vmem [shape: f32[2,16,128], index: 3, kind: output, shape index: {}]  }
   0x1 LB: > { %s515_s13 = sadd.s32 4294967295, %s643_s12   ;;  %p519_p0 = scmp.ge.s32.totalorder %s643_s12, 1  ;;  %s643_s12 = sphi %s666_s12, %s13_s12  }
   0x2   : > { %p137_p1 = scmp.lt.s32.totalorder %s643_s12, 3 }
   0x4   : > { %p138_p2 = pnand %p519_p0, %p137_p1 }
   0x5   : > { %p161_p3 = scmp.lt.s32.totalorder (!%p138_p2), %s515_s13, 1  ;;  %v172_v0 = vld [vmem:[%s812_s1 + $0x8] sm:$0xff] (!%p138_p2)  ;;  %vm275_vm0 = vcmask (!%p138_p2), 588800   ;;  %v442_v1 = vld [vmem:[%s813_s2] sm:$0xff] (!%p138_p2)  ;;  %v645_v2 = vmov (!%p138_p2), 0  }
   0x6   : > { %141 = sbr.rel (%p138_p2) target bundleno = 298 (0x12a), region = 32  ;;  %523 = vmatprep.mubr.msk.f32.mxu0 (!%p138_p2), %vm275_vm0, %v172_v0  ;;  %525 = vmatprep.mubr.msk.f32.mxu1 (!%p138_p2), %vm275_vm0, %v172_v0  ;;  %v443_v3 = vld [vmem:[%s813_s2 + $0x8] sm:$0xff] (!%p138_p2) }
   0x7   : > { %636 = vset.pattern.permute.xlu0 (!%p138_p2), %v645_v2 }
   0x8   : > { %446 = vperm.xlu0 (!%p138_p2), %636, %v442_v1  }
   0xc   : > { %451 = vperm.xlu0 (!%p138_p2), %636, %v443_v3  }
   0xd   : > { %s816_s13 = smov (!%p161_p3, %s515_s13), 1 }
   0xe   : > { %s626_s18 = smul.u32 800, %s816_s13  ;;  %s529_s30 = sshll.u32 %s816_s13, 4 }
   0xf   : > { %s170_s6 = scalar_lea.vmem %s814_s3, %s529_s30 }
  0x10   : > { %s691_s23 = scalar_lea.vmem %s811_s0, %s626_s18 }
  0x11   : > { %v176_v4 = vld [vmem:[%s691_s23 + $0x8] sm:$0xff]  ;;  %v178_v6 = vld [vmem:[%s691_s23 + $0x18] sm:$0xff]  ;;  %v175_v9 = vld [vmem:[%s691_s23] sm:$0xff] }
  0x12   : > { %v180_v5 = vld [vmem:[%s691_s23 + $0x28] sm:$0xff]  ;;  %v182_v8 = vld [vmem:[%s691_s23 + $0x38] sm:$0xff]  ;;  %v179_v10 = vld [vmem:[%s691_s23 + $0x20] sm:$0xff] }
  0x13   : > { %v530_v7 = vpack.c.bf16 %v180_v5, %v176_v4  ;;  %v578_v11 = vpack.c.bf16 %v182_v8, %v178_v6  ;;  %v532_v12 = vpack.c.bf16 %v179_v10, %v175_v9  ;;  %v177_v13 = vld [vmem:[%s691_s23 + $0x10] sm:$0xff]  ;;  %v184_v15 = vld [vmem:[%s691_s23 + $0x48] sm:$0xff]  ;;  %v186_v18 = vld [vmem:[%s691_s23 + $0x58] sm:$0xff] }
  0x14   : > { %v181_v14 = vld [vmem:[%s691_s23 + $0x30] sm:$0xff]  ;;  %v188_v17 = vld [vmem:[%s691_s23 + $0x68] sm:$0xff]  ;;  %v190_v19 = vld [vmem:[%s691_s23 + $0x78] sm:$0xff] }
  0x15   : > { %531 = vmatprep.subr.bf16.mxu0 %v530_v7  ;;  %v580_v16 = vpack.c.bf16 %v181_v14, %v177_v13  ;;  %579 = vmatprep.subr.bf16.mxu1 %v578_v11  ;;  %v534_v20 = vpack.c.bf16 %v188_v17, %v184_v15  ;;  %v582_v21 = vpack.c.bf16 %v190_v19, %v186_v18  ;;  %v183_v22 = vld [vmem:[%s691_s23 + $0x40] sm:$0xff]  ;;  %v185_v24 = vld [vmem:[%s691_s23 + $0x50] sm:$0xff]  ;;  %v192_v27 = vld [vmem:[%s691_s23 + $0x88] sm:$0xff] }
  0x16   : > { %533 = vmatpush1.bf16.msra.mxu0 %v532_v12  ;;  %v187_v23 = vld [vmem:[%s691_s23 + $0x60] sm:$0xff]  ;;  %v189_v26 = vld [vmem:[%s691_s23 + $0x70] sm:$0xff]  ;;  %v196_v28 = vld [vmem:[%s691_s23 + $0xa8] sm:$0xff] }
  0x17   : > { %581 = vmatpush1.bf16.msra.mxu1 %v580_v16  ;;  %v536_v25 = vpack.c.bf16 %v187_v23, %v183_v22  ;;  %535 = vmatprep.subr.bf16.mxu0 %v534_v20  ;;  %v584_v29 = vpack.c.bf16 %v189_v26, %v185_v24  ;;  %v538_v30 = vpack.c.bf16 %v196_v28, %v192_v27  ;;  %v194_v31 = vld [vmem:[%s691_s23 + $0x98] sm:$0xff]  ;;  %v191_v33 = vld [vmem:[%s691_s23 + $0x80] sm:$0xff]  ;;  %v193_v36 = vld [vmem:[%s691_s23 + $0x90] sm:$0xff] }
  0x18   : > { %583 = vmatprep.subr.bf16.mxu1 %v582_v21  ;;  %v198_v32 = vld [vmem:[%s691_s23 + $0xb8] sm:$0xff]  ;;  %v195_v35 = vld [vmem:[%s691_s23 + $0xa0] sm:$0xff]  ;;  %v197_v37 = vld [vmem:[%s691_s23 + $0xb0] sm:$0xff] }
  0x19   : > { %v586_v34 = vpack.c.bf16 %v198_v32, %v194_v31  ;;  %v540_v38 = vpack.c.bf16 %v195_v35, %v191_v33  ;;  %v200_v39 = vld [vmem:[%s691_s23 + $0xc8] sm:$0xff]  ;;  %v202_v41 = vld [vmem:[%s691_s23 + $0xd8] sm:$0xff]  ;;  %v588_v42 = vpack.c.bf16 %v197_v37, %v193_v36  ;;  %v199_v45 = vld [vmem:[%s691_s23 + $0xc0] sm:$0xff] }
  0x1a   : > { %537 = vmatpush1.bf16.msra.mxu0 %v536_v25  ;;  %v204_v40 = vld [vmem:[%s691_s23 + $0xe8] sm:$0xff]  ;;  %v206_v44 = vld [vmem:[%s691_s23 + $0xf8] sm:$0xff]  ;;  %v203_v46 = vld [vmem:[%s691_s23 + $0xe0] sm:$0xff] }
  0x1b   : > { %585 = vmatpush1.bf16.msra.mxu1 %v584_v29  ;;  %539 = vmatprep.subr.bf16.mxu0 %v538_v30  ;;  %v542_v43 = vpack.c.bf16 %v204_v40, %v200_v39  ;;  %v590_v47 = vpack.c.bf16 %v206_v44, %v202_v41  ;;  %v201_v48 = vld [vmem:[%s691_s23 + $0xd0] sm:$0xff]  ;;  %v208_v50 = vld [vmem:[%s691_s23 + $0x108] sm:$0xff]  ;;  %v210_v52 = vld [vmem:[%s691_s23 + $0x118] sm:$0xff]  ;;  %v544_v54 = vpack.c.bf16 %v203_v46, %v199_v45 }
  0x1c   : > { %587 = vmatprep.subr.bf16.mxu1 %v586_v34  ;;  %v205_v49 = vld [vmem:[%s691_s23 + $0xf0] sm:$0xff]  ;;  %v212_v51 = vld [vmem:[%s691_s23 + $0x128] sm:$0xff]  ;;  %v214_v53 = vld [vmem:[%s691_s23 + $0x138] sm:$0xff] }
  0x1d   : > { %v592_v55 = vpack.c.bf16 %v205_v49, %v201_v48  ;;  %v546_v56 = vpack.c.bf16 %v212_v51, %v208_v50  ;;  %v207_v57 = vld [vmem:[%s691_s23 + $0x100] sm:$0xff]  ;;  %v209_v59 = vld [vmem:[%s691_s23 + $0x110] sm:$0xff]  ;;  %v594_v60 = vpack.c.bf16 %v214_v53, %v210_v52  ;;  %v216_v62 = vld [vmem:[%s691_s23 + $0x148] sm:$0xff] }
  0x1e   : > { %541 = vmatpush1.bf16.msra.mxu0 %v540_v38  ;;  %v211_v58 = vld [vmem:[%s691_s23 + $0x120] sm:$0xff]  ;;  %v213_v61 = vld [vmem:[%s691_s23 + $0x130] sm:$0xff]  ;;  %v220_v63 = vld [vmem:[%s691_s23 + $0x168] sm:$0xff] }
  0x1f   : > { %589 = vmatpush1.bf16.msra.mxu1 %v588_v42  ;;  %543 = vmatprep.subr.bf16.mxu0 %v542_v43  ;;  %v218_v0 = vld [vmem:[%s691_s23 + $0x158] sm:$0xff]  ;;  %v548_v2 = vpack.c.bf16 %v211_v58, %v207_v57  ;;  %v596_v3 = vpack.c.bf16 %v213_v61, %v209_v59  ;;  %v550_v4 = vpack.c.bf16 %v220_v63, %v216_v62  ;;  %v215_v5 = vld [vmem:[%s691_s23 + $0x140] sm:$0xff]  ;;  %v217_v7 = vld [vmem:[%s691_s23 + $0x150] sm:$0xff] }
  0x20   : > { %591 = vmatprep.subr.bf16.mxu1 %v590_v47  ;;  %v222_v1 = vld [vmem:[%s691_s23 + $0x178] sm:$0xff]  ;;  %v219_v6 = vld [vmem:[%s691_s23 + $0x160] sm:$0xff]  ;;  %v221_v9 = vld [vmem:[%s691_s23 + $0x170] sm:$0xff] }
  0x21   : > { %v598_v8 = vpack.c.bf16 %v222_v1, %v218_v0  ;;  %v224_v10 = vld [vmem:[%s691_s23 + $0x188] sm:$0xff]  ;;  %v226_v12 = vld [vmem:[%s691_s23 + $0x198] sm:$0xff]  ;;  %v552_v14 = vpack.c.bf16 %v219_v6, %v215_v5  ;;  %v600_v15 = vpack.c.bf16 %v221_v9, %v217_v7  ;;  %v223_v17 = vld [vmem:[%s691_s23 + $0x180] sm:$0xff] }
  0x22   : > { %545 = vmatpush1.bf16.msra.mxu0 %v544_v54  ;;  %v228_v11 = vld [vmem:[%s691_s23 + $0x1a8] sm:$0xff]  ;;  %v230_v13 = vld [vmem:[%s691_s23 + $0x1b8] sm:$0xff]  ;;  %v227_v18 = vld [vmem:[%s691_s23 + $0x1a0] sm:$0xff] }
  0x23   : > { %593 = vmatpush1.bf16.msra.mxu1 %v592_v55  ;;  %547 = vmatprep.subr.bf16.mxu0 %v546_v56  ;;  %v554_v16 = vpack.c.bf16 %v228_v11, %v224_v10  ;;  %v225_v19 = vld [vmem:[%s691_s23 + $0x190] sm:$0xff]  ;;  %v602_v20 = vpack.c.bf16 %v230_v13, %v226_v12  ;;  %v232_v22 = vld [vmem:[%s691_s23 + $0x1c8] sm:$0xff]  ;;  %v234_v24 = vld [vmem:[%s691_s23 + $0x1d8] sm:$0xff]  ;;  %v556_v26 = vpack.c.bf16 %v227_v18, %v223_v17 }
  0x24   : > { %595 = vmatprep.subr.bf16.mxu1 %v594_v60  ;;  %v229_v21 = vld [vmem:[%s691_s23 + $0x1b0] sm:$0xff]  ;;  %v236_v23 = vld [vmem:[%s691_s23 + $0x1e8] sm:$0xff]  ;;  %v238_v25 = vld [vmem:[%s691_s23 + $0x1f8] sm:$0xff] }
  0x25   : > { %v604_v27 = vpack.c.bf16 %v229_v21, %v225_v19  ;;  %v558_v28 = vpack.c.bf16 %v236_v23, %v232_v22  ;;  %v231_v29 = vld [vmem:[%s691_s23 + $0x1c0] sm:$0xff]  ;;  %v233_v31 = vld [vmem:[%s691_s23 + $0x1d0] sm:$0xff]  ;;  %v606_v32 = vpack.c.bf16 %v238_v25, %v234_v24  ;;  %v240_v34 = vld [vmem:[%s691_s23 + $0x208] sm:$0xff] }
  0x26   : > { %549 = vmatpush1.bf16.msra.mxu0 %v548_v2  ;;  %v235_v30 = vld [vmem:[%s691_s23 + $0x1e0] sm:$0xff]  ;;  %v237_v33 = vld [vmem:[%s691_s23 + $0x1f0] sm:$0xff]  ;;  %v244_v35 = vld [vmem:[%s691_s23 + $0x228] sm:$0xff] }
  0x27   : > { %597 = vmatpush1.bf16.msra.mxu1 %v596_v3  ;;  %551 = vmatprep.subr.bf16.mxu0 %v550_v4  ;;  %v242_v36 = vld [vmem:[%s691_s23 + $0x218] sm:$0xff]  ;;  %v560_v38 = vpack.c.bf16 %v235_v30, %v231_v29  ;;  %v608_v39 = vpack.c.bf16 %v237_v33, %v233_v31  ;;  %v562_v40 = vpack.c.bf16 %v244_v35, %v240_v34  ;;  %v239_v41 = vld [vmem:[%s691_s23 + $0x200] sm:$0xff]  ;;  %v241_v43 = vld [vmem:[%s691_s23 + $0x210] sm:$0xff] }
  0x28   : > { %599 = vmatprep.subr.bf16.mxu1 %v598_v8  ;;  %v246_v37 = vld [vmem:[%s691_s23 + $0x238] sm:$0xff]  ;;  %v243_v42 = vld [vmem:[%s691_s23 + $0x220] sm:$0xff]  ;;  %v245_v45 = vld [vmem:[%s691_s23 + $0x230] sm:$0xff] }
  0x29   : > { %v610_v44 = vpack.c.bf16 %v246_v37, %v242_v36  ;;  %v248_v46 = vld [vmem:[%s691_s23 + $0x248] sm:$0xff]  ;;  %v250_v48 = vld [vmem:[%s691_s23 + $0x258] sm:$0xff]  ;;  %v564_v50 = vpack.c.bf16 %v243_v42, %v239_v41  ;;  %v612_v51 = vpack.c.bf16 %v245_v45, %v241_v43  ;;  %v247_v53 = vld [vmem:[%s691_s23 + $0x240] sm:$0xff] }
  0x2a   : > { %553 = vmatpush1.bf16.msra.mxu0 %v552_v14  ;;  %v252_v47 = vld [vmem:[%s691_s23 + $0x268] sm:$0xff]  ;;  %v254_v49 = vld [vmem:[%s691_s23 + $0x278] sm:$0xff]  ;;  %v251_v54 = vld [vmem:[%s691_s23 + $0x260] sm:$0xff] }
  0x2b   : > { %601 = vmatpush1.bf16.msra.mxu1 %v600_v15  ;;  %555 = vmatprep.subr.bf16.mxu0 %v554_v16  ;;  %v566_v52 = vpack.c.bf16 %v252_v47, %v248_v46  ;;  %v249_v55 = vld [vmem:[%s691_s23 + $0x250] sm:$0xff]  ;;  %v614_v56 = vpack.c.bf16 %v254_v49, %v250_v48  ;;  %v256_v58 = vld [vmem:[%s691_s23 + $0x288] sm:$0xff]  ;;  %v258_v60 = vld [vmem:[%s691_s23 + $0x298] sm:$0xff]  ;;  %v568_v62 = vpack.c.bf16 %v251_v54, %v247_v53 }
  0x2c   : > { %603 = vmatprep.subr.bf16.mxu1 %v602_v20  ;;  %v253_v57 = vld [vmem:[%s691_s23 + $0x270] sm:$0xff]  ;;  %v260_v59 = vld [vmem:[%s691_s23 + $0x2a8] sm:$0xff]  ;;  %v262_v61 = vld [vmem:[%s691_s23 + $0x2b8] sm:$0xff] }
  0x2d   : > { %v616_v63 = vpack.c.bf16 %v253_v57, %v249_v55  ;;  %v570_v0 = vpack.c.bf16 %v260_v59, %v256_v58  ;;  %v255_v1 = vld [vmem:[%s691_s23 + $0x280] sm:$0xff]  ;;  %v257_v3 = vld [vmem:[%s691_s23 + $0x290] sm:$0xff]  ;;  %v618_v4 = vpack.c.bf16 %v262_v61, %v258_v60  ;;  %v264_v6 = vld [vmem:[%s691_s23 + $0x2c8] sm:$0xff] }
  0x2e   : > { %557 = vmatpush1.bf16.msra.mxu0 %v556_v26  ;;  %v259_v2 = vld [vmem:[%s691_s23 + $0x2a0] sm:$0xff]  ;;  %v261_v5 = vld [vmem:[%s691_s23 + $0x2b0] sm:$0xff]  ;;  %v268_v7 = vld [vmem:[%s691_s23 + $0x2e8] sm:$0xff] }
  0x2f   : > { %605 = vmatpush1.bf16.msra.mxu1 %v604_v27  ;;  %559 = vmatprep.subr.bf16.mxu0 %v558_v28  ;;  %v266_v8 = vld [vmem:[%s691_s23 + $0x2d8] sm:$0xff]  ;;  %v572_v10 = vpack.c.bf16 %v259_v2, %v255_v1  ;;  %v620_v11 = vpack.c.bf16 %v261_v5, %v257_v3  ;;  %v574_v12 = vpack.c.bf16 %v268_v7, %v264_v6  ;;  %v263_v13 = vld [vmem:[%s691_s23 + $0x2c0] sm:$0xff]  ;;  %v265_v16 = vld [vmem:[%s691_s23 + $0x2d0] sm:$0xff] }
  0x30   : > { %607 = vmatprep.subr.bf16.mxu1 %v606_v32  ;;  %v270_v9 = vld [vmem:[%s691_s23 + $0x2f8] sm:$0xff]  ;;  %v267_v14 = vld [vmem:[%s691_s23 + $0x2e0] sm:$0xff]  ;;  %v269_v17 = vld [vmem:[%s691_s23 + $0x2f0] sm:$0xff] }
  0x31   : > { %v622_v15 = vpack.c.bf16 %v270_v9, %v266_v8  ;;  %v576_v18 = vpack.c.bf16 %v267_v14, %v263_v13  ;;  %v624_v19 = vpack.c.bf16 %v269_v17, %v265_v16  ;;  %v272_v20 = vld [vmem:[%s691_s23 + $0x308] sm:$0xff]  ;;  %v274_v21 = vld [vmem:[%s691_s23 + $0x318] sm:$0xff]  ;;  %v271_v22 = vld [vmem:[%s691_s23 + $0x300] sm:$0xff] }
  0x32   : > { %561 = vmatpush1.bf16.msra.mxu0 %v560_v38  ;;  %v273_v23 = vld [vmem:[%s691_s23 + $0x310] sm:$0xff]  ;;  %v171_v24 = vld [vmem:[%s812_s1] sm:$0xff]  ;;  %v174_v25 = vld [vmem:[%s812_s1 + $0x18] sm:$0xff] }
  0x33   : > { %609 = vmatpush1.bf16.msra.mxu1 %v608_v39  ;;  %563 = vmatprep.subr.bf16.mxu0 %v562_v40  ;;  %v173_v26 = vld [vmem:[%s812_s1 + $0x10] sm:$0xff] }
  0x34   : > { %611 = vmatprep.subr.bf16.mxu1 %v610_v44 }
  0x36   : > { %565 = vmatpush1.bf16.msra.mxu0 %v564_v50 }
  0x37   : > { %613 = vmatpush1.bf16.msra.mxu1 %v612_v51  ;;  %567 = vmatprep.subr.bf16.mxu0 %v566_v52 }
  0x38   : > { %615 = vmatprep.subr.bf16.mxu1 %v614_v56 }
  0x3a   : > { %569 = vmatpush1.bf16.msra.mxu0 %v568_v62 }
  0x3b   : > { %617 = vmatpush1.bf16.msra.mxu1 %v616_v63  ;;  %571 = vmatprep.subr.bf16.mxu0 %v570_v0 }
  0x3c   : > { %619 = vmatprep.subr.bf16.mxu1 %v618_v4 }
  0x3e   : > { %573 = vmatpush1.bf16.msra.mxu0 %v572_v10 }
  0x3f   : > { %621 = vmatpush1.bf16.msra.mxu1 %v620_v11  ;;  %575 = vmatprep.subr.bf16.mxu0 %v574_v12 }
  0x40   : > { %623 = vmatprep.subr.bf16.mxu1 %v622_v15 }
  0x42   : > { %577 = vmatpush1.bf16.msra.mxu0 %v576_v18 }
  0x43   : > { %625 = vmatpush1.bf16.msra.mxu1 %v624_v19  ;;  %330 = vmatprep.subr.mxu0 %v272_v20 }
  0x44   : > { %407 = vmatprep.subr.mxu1 %v274_v21 }
  0x46   : > { %331 = vmatpush1.msra.mxu0 %v271_v22 }
  0x47   : > { %408 = vmatpush1.msra.mxu1 %v273_v23  ;;  %347 = vmatmul.mubr.f32.vlgmr.msra.gmra.mrb[0].mxu0 %v171_v24 }
  0x48   : > { %424 = vmatmul.mubr.f32.vlgmr.msra.gmra.mrb[0].mxu1 %v171_v24  ;;  %524 = vmatprep.mubr.msk.f32.mxu0 %vm275_vm0, %v174_v25 }
  0x49   : > { %526 = vmatprep.mubr.msk.f32.mxu1 %vm275_vm0, %v174_v25 }
  0x4b   : > { %353 = vmatmul.mubr.f32.gmra.mrb[2].mxu0 %v173_v26 }
  0x4c   : > { %430 = vmatmul.mubr.f32.gmra.mrb[2].mxu1 %v173_v26 }
  0x87   : > { %v447_v33 = vpop.permute.xlu0 %446 }
  0x8b   : > { %v452_v44 = vpop.permute.xlu0 %451 }
 0x11a   : > { %v348_v27 = vpop.f32.mrb[0].mxu0 }
 0x11b   : > { %v425_v28 = vpop.f32.mrb[0].mxu1  ;;  %v350_v29 = vpop.f32.mrb[1].mxu0 }
 0x11c   : > { %v436_v30 = vmax.f32 %v348_v27, %v350_v29  ;;  %v427_v31 = vpop.f32.mrb[1].mxu1 }
 0x11d   : > { %v438_v32 = vmax.f32 %v425_v28, %v427_v31 }
 0x11e   : > { %v354_v34 = vpop.f32.mrb[2].mxu0 }
 0x11f   : > { %v440_v35 = vmax.f32 %v436_v30, %v438_v32  ;;  %v431_v36 = vpop.f32.mrb[2].mxu1  ;;  %v356_v37 = vpop.f32.mrb[3].mxu0 }
 0x120   : > { %v437_v38 = vmax.f32 %v354_v34, %v356_v37  ;;  %v433_v39 = vpop.f32.mrb[3].mxu1 }
 0x121   : > { %v454_v40 = vadd.f32 %v447_v33, %v440_v35  ;;  %v439_v41 = vmax.f32 %v431_v36, %v433_v39 }
 0x123   : > { %v456_v42 = vmax.f32 %v454_v40, 0.0  ;;  %v441_v43 = vmax.f32 %v437_v38, %v439_v41 }
 0x125   : > { %458 = vst [vmem:[%s170_s6] sm:$0xff] %v456_v42  ;;  %v455_v45 = vadd.f32 %v452_v44, %v441_v43 }
 0x127   : > { %v457_v46 = vmax.f32 %v455_v45, 0.0 }
 0x129   : > { %459 = vst [vmem:[%s170_s6 + $0x8] sm:$0xff] %v457_v46 }
 0x12a PF: > { %s13_s12 = sadd.s32 1, %s643_s12  }
 0x12b   : > { %p10_p4 = scmp.ge.s32.totalorder %s13_s12, 4  }
 0x12d   :  { %12 = sbr.rel (!%p10_p4) target bundleno = 1 (0x1), region = 62 }

// kernel: polycnn_forward.5
= control target key start
LH: loop header
LB: loop body
LE: loop exit
PB: predicated region body
PF: predicated region fallthrough
CT: control target
= control target key end

     0   :  { %v1512_v51 = vmov 1983009808   ;;  %v150_v53 = vlaneseq  ;;  %s2366_s0 = inlined_call_operand.vmem [shape: f32[2,512], index: 0, kind: input, shape index: {}]   ;;  %s2367_s1 = inlined_call_operand.vmem [shape: f32[2048,128], index: 1, kind: input, shape index: {}]   ;;  %s2368_s2 = inlined_call_operand.vmem [shape: f32[1,128], index: 2, kind: input, shape index: {}]   ;;  %s2369_s3 = inlined_call_operand.hbm [shape: f32[2,128], index: 3, kind: output, shape index: {}]  }
   0x1   :  { %v97_v0 = vld [vmem:[%s2367_s1 + $0x280] sm:$0xff]  ;;  %v98_v1 = vld [vmem:[%s2367_s1 + $0x288] sm:$0xff]  ;;  %v99_v11 = vld [vmem:[%s2367_s1 + $0x290] sm:$0xff]  ;;  %v148_v52 = vunpack.c.l.s4 %v1512_v51 }
   0x2   :  { %v129_v2 = vld [vmem:[%s2367_s1 + $0x380] sm:$0xff]  ;;  %v1229_v3 = vpack.c.bf16 %v98_v1, %v97_v0  ;;  %v130_v4 = vld [vmem:[%s2367_s1 + $0x388] sm:$0xff]  ;;  %v100_v13 = vld [vmem:[%s2367_s1 + $0x298] sm:$0xff] }
   0x3   :  { %v81_v5 = vld [vmem:[%s2367_s1 + $0x200] sm:$0xff]  ;;  %v82_v6 = vld [vmem:[%s2367_s1 + $0x208] sm:$0xff]  ;;  %v1261_v7 = vpack.c.bf16 %v130_v4, %v129_v2  ;;  %v131_v14 = vld [vmem:[%s2367_s1 + $0x390] sm:$0xff]  ;;  %v1233_v16 = vpack.c.bf16 %v100_v13, %v99_v11  ;;  %v149_v2 = vunpack.c.0.s8 %v148_v52 }
   0x4   :  { %v1231_v8 = vpack.c.bf16 %v82_v6, %v81_v5  ;;  %v113_v9 = vld [vmem:[%s2367_s1 + $0x300] sm:$0xff]  ;;  %v114_v10 = vld [vmem:[%s2367_s1 + $0x308] sm:$0xff]  ;;  %1230 = vmatprep.subr.bf16.mxu0 %v1229_v3  ;;  %v132_v15 = vld [vmem:[%s2367_s1 + $0x398] sm:$0xff]  ;;  %v151_v3 = vshrl.u32 %v150_v53, 7 }
   0x5   :  { %v1263_v12 = vpack.c.bf16 %v114_v10, %v113_v9  ;;  %1262 = vmatprep.subr.bf16.mxu1 %v1261_v7  ;;  %v1265_v17 = vpack.c.bf16 %v132_v15, %v131_v14  ;;  %v83_v18 = vld [vmem:[%s2367_s1 + $0x210] sm:$0xff]  ;;  %v84_v19 = vld [vmem:[%s2367_s1 + $0x218] sm:$0xff]  ;;  %v101_v23 = vld [vmem:[%s2367_s1 + $0x2a0] sm:$0xff] }
   0x6   :  { %1232 = vmatpush3.bf16.msra.mxu0 %v1231_v8  ;;  %v115_v20 = vld [vmem:[%s2367_s1 + $0x310] sm:$0xff]  ;;  %v1235_v21 = vpack.c.bf16 %v84_v19, %v83_v18  ;;  %v116_v22 = vld [vmem:[%s2367_s1 + $0x318] sm:$0xff]  ;;  %v102_v24 = vld [vmem:[%s2367_s1 + $0x2a8] sm:$0xff] }
   0x7   :  { %1264 = vmatpush3.bf16.msra.mxu1 %v1263_v12  ;;  %1234 = vmatprep.subr.bf16.mxu0 %v1233_v16  ;;  %v1267_v25 = vpack.c.bf16 %v116_v22, %v115_v20  ;;  %v1237_v26 = vpack.c.bf16 %v102_v24, %v101_v23  ;;  %v133_v27 = vld [vmem:[%s2367_s1 + $0x3a0] sm:$0xff]  ;;  %v134_v28 = vld [vmem:[%s2367_s1 + $0x3a8] sm:$0xff]  ;;  %v103_v35 = vld [vmem:[%s2367_s1 + $0x2b0] sm:$0xff] }
   0x8   :  { %1266 = vmatprep.subr.bf16.mxu1 %v1265_v17  ;;  %v85_v29 = vld [vmem:[%s2367_s1 + $0x220] sm:$0xff]  ;;  %v1269_v30 = vpack.c.bf16 %v134_v28, %v133_v27  ;;  %v86_v31 = vld [vmem:[%s2367_s1 + $0x228] sm:$0xff]  ;;  %v104_v36 = vld [vmem:[%s2367_s1 + $0x2b8] sm:$0xff]  ;;  %v1693_v17 = vsub.s32 %v149_v2, %v151_v3 }
   0x9   :  { %v117_v32 = vld [vmem:[%s2367_s1 + $0x320] sm:$0xff]  ;;  %v118_v33 = vld [vmem:[%s2367_s1 + $0x328] sm:$0xff]  ;;  %v1239_v34 = vpack.c.bf16 %v86_v31, %v85_v29  ;;  %v135_v37 = vld [vmem:[%s2367_s1 + $0x3b0] sm:$0xff]  ;;  %v1241_v39 = vpack.c.bf16 %v104_v36, %v103_v35 }
   0xa   :  { %1236 = vmatpush3.bf16.msra.mxu0 %v1235_v21  ;;  %v1271_v38 = vpack.c.bf16 %v118_v33, %v117_v32  ;;  %v136_v40 = vld [vmem:[%s2367_s1 + $0x3b8] sm:$0xff]  ;;  %v87_v41 = vld [vmem:[%s2367_s1 + $0x230] sm:$0xff]  ;;  %v105_v46 = vld [vmem:[%s2367_s1 + $0x2c0] sm:$0xff] }
   0xb   :  { %1268 = vmatpush3.bf16.msra.mxu1 %v1267_v25  ;;  %1238 = vmatprep.subr.bf16.mxu0 %v1237_v26  ;;  %v88_v42 = vld [vmem:[%s2367_s1 + $0x238] sm:$0xff]  ;;  %v1273_v43 = vpack.c.bf16 %v136_v40, %v135_v37  ;;  %v119_v44 = vld [vmem:[%s2367_s1 + $0x330] sm:$0xff]  ;;  %v106_v47 = vld [vmem:[%s2367_s1 + $0x2c8] sm:$0xff] }
   0xc   :  { %1270 = vmatprep.subr.bf16.mxu1 %v1269_v30  ;;  %v120_v45 = vld [vmem:[%s2367_s1 + $0x338] sm:$0xff]  ;;  %v137_v48 = vld [vmem:[%s2367_s1 + $0x3c0] sm:$0xff]  ;;  %v138_v49 = vld [vmem:[%s2367_s1 + $0x3c8] sm:$0xff]  ;;  %v1243_v50 = vpack.c.bf16 %v88_v42, %v87_v41  ;;  %v1245_v55 = vpack.c.bf16 %v106_v47, %v105_v46 }
   0xd   :  { %v1275_v54 = vpack.c.bf16 %v120_v45, %v119_v44  ;;  %v89_v56 = vld [vmem:[%s2367_s1 + $0x240] sm:$0xff]  ;;  %v90_v57 = vld [vmem:[%s2367_s1 + $0x248] sm:$0xff]  ;;  %v1277_v59 = vpack.c.bf16 %v138_v49, %v137_v48  ;;  %v107_v61 = vld [vmem:[%s2367_s1 + $0x2d0] sm:$0xff] }
   0xe   :  { %1240 = vmatpush3.bf16.msra.mxu0 %v1239_v34  ;;  %v121_v58 = vld [vmem:[%s2367_s1 + $0x340] sm:$0xff]  ;;  %v122_v60 = vld [vmem:[%s2367_s1 + $0x348] sm:$0xff]  ;;  %v108_v62 = vld [vmem:[%s2367_s1 + $0x2d8] sm:$0xff]  ;;  %v1247_v1 = vpack.c.bf16 %v90_v57, %v89_v56 }
   0xf   :  { %1272 = vmatpush3.bf16.msra.mxu1 %v1271_v38  ;;  %1242 = vmatprep.subr.bf16.mxu0 %v1241_v39  ;;  %v139_v63 = vld [vmem:[%s2367_s1 + $0x3d0] sm:$0xff]  ;;  %v140_v0 = vld [vmem:[%s2367_s1 + $0x3d8] sm:$0xff]  ;;  %v1279_v4 = vpack.c.bf16 %v122_v60, %v121_v58  ;;  %v1249_v5 = vpack.c.bf16 %v108_v62, %v107_v61  ;;  %v109_v11 = vld [vmem:[%s2367_s1 + $0x2e0] sm:$0xff] }
  0x10   :  { %1274 = vmatprep.subr.bf16.mxu1 %v1273_v43  ;;  %v91_v6 = vld [vmem:[%s2367_s1 + $0x250] sm:$0xff]  ;;  %v92_v7 = vld [vmem:[%s2367_s1 + $0x258] sm:$0xff]  ;;  %v1281_v9 = vpack.c.bf16 %v140_v0, %v139_v63  ;;  %v110_v12 = vld [vmem:[%s2367_s1 + $0x2e8] sm:$0xff] }
  0x11   :  { %v123_v8 = vld [vmem:[%s2367_s1 + $0x350] sm:$0xff]  ;;  %v124_v10 = vld [vmem:[%s2367_s1 + $0x358] sm:$0xff]  ;;  %v141_v13 = vld [vmem:[%s2367_s1 + $0x3e0] sm:$0xff]  ;;  %v1251_v15 = vpack.c.bf16 %v92_v7, %v91_v6  ;;  %v1253_v19 = vpack.c.bf16 %v110_v12, %v109_v11 }
  0x12   :  { %1244 = vmatpush3.bf16.msra.mxu0 %v1243_v50  ;;  %v142_v14 = vld [vmem:[%s2367_s1 + $0x3e8] sm:$0xff]  ;;  %v93_v16 = vld [vmem:[%s2367_s1 + $0x260] sm:$0xff]  ;;  %v1283_v18 = vpack.c.bf16 %v124_v10, %v123_v8  ;;  %v111_v25 = vld [vmem:[%s2367_s1 + $0x2f0] sm:$0xff] }
  0x13   :  { %1276 = vmatpush3.bf16.msra.mxu1 %v1275_v54  ;;  %1246 = vmatprep.subr.bf16.mxu0 %v1245_v55  ;;  %v94_v20 = vld [vmem:[%s2367_s1 + $0x268] sm:$0xff]  ;;  %v125_v21 = vld [vmem:[%s2367_s1 + $0x360] sm:$0xff]  ;;  %v1285_v23 = vpack.c.bf16 %v142_v14, %v141_v13  ;;  %v112_v26 = vld [vmem:[%s2367_s1 + $0x2f8] sm:$0xff] }
  0x14   :  { %1278 = vmatprep.subr.bf16.mxu1 %v1277_v59  ;;  %v15_v22 = vld [vmem:[%s2366_s0] sm:$0xff]  ;;  %v126_v24 = vld [vmem:[%s2367_s1 + $0x368] sm:$0xff]  ;;  %v143_v28 = vld [vmem:[%s2367_s1 + $0x3f0] sm:$0xff]  ;;  %v1255_v30 = vpack.c.bf16 %v94_v20, %v93_v16  ;;  %v1257_v34 = vpack.c.bf16 %v112_v26, %v111_v25 }
  0x15   :  { %v80_v27 = vmul.f32 %v15_v22, %v15_v22  ;;  %v144_v29 = vld [vmem:[%s2367_s1 + $0x3f8] sm:$0xff]  ;;  %v1287_v33 = vpack.c.bf16 %v126_v24, %v125_v21  ;;  %v95_v35 = vld [vmem:[%s2367_s1 + $0x270] sm:$0xff]  ;;  %v32_v42 = vld [vmem:[%s2367_s1 + $0x80] sm:$0xff]  ;;  %v308_v46 = vcombine.high %v15_v22, %v15_v22  ;;  %v1766_v59 = vrot.slane %v15_v22, %v1693_v17 }
  0x16   :  { %1248 = vmatpush3.bf16.msra.mxu0 %v1247_v1  ;;  %v96_v36 = vld [vmem:[%s2367_s1 + $0x278] sm:$0xff]  ;;  %v127_v37 = vld [vmem:[%s2367_s1 + $0x370] sm:$0xff]  ;;  %v1289_v38 = vpack.c.bf16 %v144_v29, %v143_v28  ;;  %v33_v43 = vld [vmem:[%s2367_s1 + $0x88] sm:$0xff] }
  0x17   :  { %1280 = vmatpush3.bf16.msra.mxu1 %v1279_v4  ;;  %1250 = vmatprep.subr.bf16.mxu0 %v1249_v5  ;;  %v153_v31 = vrot.slane %v80_v27, %v1693_v17  ;;  %v146_v32 = vcombine.high %v80_v27, %v80_v27  ;;  %v128_v39 = vld [vmem:[%s2367_s1 + $0x378] sm:$0xff]  ;;  %v64_v44 = vld [vmem:[%s2367_s1 + $0x180] sm:$0xff]  ;;  %v65_v45 = vld [vmem:[%s2367_s1 + $0x188] sm:$0xff]  ;;  %v1259_v47 = vpack.c.bf16 %v96_v36, %v95_v35 }
  0x18   :  { %1282 = vmatprep.subr.bf16.mxu1 %v1281_v9  ;;  %v1745_v49 = vmul.f32 %v80_v27, %v15_v22  ;;  %v1291_v50 = vpack.c.bf16 %v128_v39, %v127_v37  ;;  %v1293_v51 = vpack.c.bf16 %v33_v43, %v32_v42  ;;  %v16_v52 = vld [vmem:[%s2367_s1] sm:$0xff]  ;;  %v17_v53 = vld [vmem:[%s2367_s1 + $0x8] sm:$0xff]  ;;  %v1325_v55 = vpack.c.bf16 %v65_v45, %v64_v44  ;;  %v34_v57 = vld [vmem:[%s2367_s1 + $0x90] sm:$0xff] }
  0x19   :  { %v161_v40 = vcombine.high %v153_v31, %v153_v31  ;;  %v160_v41 = vrot.slane %v146_v32, %v1693_v17  ;;  %v48_v54 = vld [vmem:[%s2367_s1 + $0x100] sm:$0xff]  ;;  %v49_v56 = vld [vmem:[%s2367_s1 + $0x108] sm:$0xff]  ;;  %v35_v58 = vld [vmem:[%s2367_s1 + $0x98] sm:$0xff]  ;;  %v1776_v63 = vrot.slane %v308_v46, %v1693_v17  ;;  %v1295_v0 = vpack.c.bf16 %v17_v53, %v16_v52 }
  0x1a   :  { %1252 = vmatpush3.bf16.msra.mxu0 %v1251_v15  ;;  %v697_v60 = vmul.f32 %v1745_v49, %v15_v22  ;;  %v66_v61 = vld [vmem:[%s2367_s1 + $0x190] sm:$0xff]  ;;  %v67_v62 = vld [vmem:[%s2367_s1 + $0x198] sm:$0xff]  ;;  %v1327_v3 = vpack.c.bf16 %v49_v56, %v48_v54  ;;  %v1297_v4 = vpack.c.bf16 %v35_v58, %v34_v57  ;;  %v36_v10 = vld [vmem:[%s2367_s1 + $0xa0] sm:$0xff]  ;;  %v323_v12 = vcombine.high %v1766_v59, %v1766_v59 }
  0x1b   :  { %1284 = vmatpush3.bf16.msra.mxu1 %v1283_v18  ;;  %1254 = vmatprep.subr.bf16.mxu0 %v1253_v19  ;;  %v162_v48 = vcombine.high %v160_v41, %v160_v41  ;;  %v18_v5 = vld [vmem:[%s2367_s1 + $0x10] sm:$0xff]  ;;  %v19_v6 = vld [vmem:[%s2367_s1 + $0x18] sm:$0xff]  ;;  %v1329_v8 = vpack.c.bf16 %v67_v62, %v66_v61  ;;  %v37_v11 = vld [vmem:[%s2367_s1 + $0xa8] sm:$0xff]  ;;  %v324_v16 = vcombine.high %v1776_v63, %v1776_v63 }
  0x1c   :  { %1286 = vmatprep.subr.bf16.mxu1 %v1285_v23  ;;  %231 = vmatprep.mubr.f32.mxu0 %v161_v40  ;;  %v1779_v1 = vrot.slane %v697_v60, %v1693_v17  ;;  %v763_v2 = vcombine.high %v697_v60, %v697_v60  ;;  %v50_v7 = vld [vmem:[%s2367_s1 + $0x110] sm:$0xff]  ;;  %v51_v9 = vld [vmem:[%s2367_s1 + $0x118] sm:$0xff]  ;;  %v68_v14 = vld [vmem:[%s2367_s1 + $0x1a0] sm:$0xff]  ;;  %v1299_v18 = vpack.c.bf16 %v19_v6, %v18_v5 }
  0x1d   :  { %301 = vmatprep.mubr.f32.mxu1 %v162_v48  ;;  %v69_v15 = vld [vmem:[%s2367_s1 + $0x1a8] sm:$0xff]  ;;  %v1331_v19 = vpack.c.bf16 %v51_v9, %v50_v7  ;;  %v1301_v20 = vpack.c.bf16 %v37_v11, %v36_v10  ;;  %v20_v21 = vld [vmem:[%s2367_s1 + $0x20] sm:$0xff]  ;;  %v38_v26 = vld [vmem:[%s2367_s1 + $0xb0] sm:$0xff] }
  0x1e   :  { %1256 = vmatpush3.bf16.msra.mxu0 %v1255_v30  ;;  %v1802_v13 = vrot.slane %v763_v2, %v1693_v17  ;;  %v21_v22 = vld [vmem:[%s2367_s1 + $0x28] sm:$0xff]  ;;  %v52_v23 = vld [vmem:[%s2367_s1 + $0x120] sm:$0xff]  ;;  %v1333_v24 = vpack.c.bf16 %v69_v15, %v68_v14  ;;  %v39_v27 = vld [vmem:[%s2367_s1 + $0xb8] sm:$0xff] }
  0x1f   :  { %1288 = vmatpush3.bf16.msra.mxu1 %v1287_v33  ;;  %1258 = vmatprep.subr.bf16.mxu0 %v1257_v34  ;;  %v53_v25 = vld [vmem:[%s2367_s1 + $0x128] sm:$0xff]  ;;  %v70_v28 = vld [vmem:[%s2367_s1 + $0x1b0] sm:$0xff]  ;;  %v71_v29 = vld [vmem:[%s2367_s1 + $0x1b8] sm:$0xff]  ;;  %v1303_v30 = vpack.c.bf16 %v21_v22, %v20_v21  ;;  %v1305_v32 = vpack.c.bf16 %v39_v27, %v38_v26 }
  0x20   :  { %1290 = vmatprep.subr.bf16.mxu1 %v1289_v38  ;;  %v22_v33 = vld [vmem:[%s2367_s1 + $0x30] sm:$0xff]  ;;  %v23_v34 = vld [vmem:[%s2367_s1 + $0x38] sm:$0xff]  ;;  %v1337_v36 = vpack.c.bf16 %v71_v29, %v70_v28  ;;  %v40_v38 = vld [vmem:[%s2367_s1 + $0xc0] sm:$0xff] }
  0x21   :  { %v54_v35 = vld [vmem:[%s2367_s1 + $0x130] sm:$0xff]  ;;  %v55_v37 = vld [vmem:[%s2367_s1 + $0x138] sm:$0xff]  ;;  %v41_v39 = vld [vmem:[%s2367_s1 + $0xc8] sm:$0xff]  ;;  %v1307_v42 = vpack.c.bf16 %v23_v34, %v22_v33 }
  0x22   :  { %1260 = vmatpush3.bf16.msra.mxu0 %v1259_v47  ;;  %v72_v40 = vld [vmem:[%s2367_s1 + $0x1c0] sm:$0xff]  ;;  %v1339_v43 = vpack.c.bf16 %v55_v37, %v54_v35  ;;  %v1309_v44 = vpack.c.bf16 %v41_v39, %v40_v38  ;;  %v25_v46 = vld [vmem:[%s2367_s1 + $0x48] sm:$0xff]  ;;  %v43_v52 = vld [vmem:[%s2367_s1 + $0xd8] sm:$0xff] }
  0x23   :  { %1292 = vmatpush3.bf16.msra.mxu1 %v1291_v50  ;;  %1294 = vmatprep.subr.bf16.mxu0 %v1293_v51  ;;  %v24_v45 = vld [vmem:[%s2367_s1 + $0x40] sm:$0xff]  ;;  %v57_v50 = vld [vmem:[%s2367_s1 + $0x148] sm:$0xff]  ;;  %v42_v51 = vld [vmem:[%s2367_s1 + $0xd0] sm:$0xff] }
  0x24   :  { %1326 = vmatprep.subr.bf16.mxu1 %v1325_v55  ;;  %v56_v47 = vld [vmem:[%s2367_s1 + $0x140] sm:$0xff]  ;;  %v74_v53 = vld [vmem:[%s2367_s1 + $0x1d0] sm:$0xff]  ;;  %v75_v54 = vld [vmem:[%s2367_s1 + $0x1d8] sm:$0xff]  ;;  %v1311_v55 = vpack.c.bf16 %v25_v46, %v24_v45  ;;  %v1313_v57 = vpack.c.bf16 %v43_v52, %v42_v51 }
  0x25   :  { %232 = vmatmul.mubr.f32.vlgmr.msra.gmra.mrb[0].mxu0 %v153_v31  ;;  %v1335_v31 = vpack.c.bf16 %v53_v25, %v52_v23  ;;  %v1343_v56 = vpack.c.bf16 %v57_v50, %v56_v47  ;;  %v26_v58 = vld [vmem:[%s2367_s1 + $0x50] sm:$0xff]  ;;  %v27_v60 = vld [vmem:[%s2367_s1 + $0x58] sm:$0xff]  ;;  %v1345_v62 = vpack.c.bf16 %v75_v54, %v74_v53  ;;  %v44_v2 = vld [vmem:[%s2367_s1 + $0xe0] sm:$0xff] }
  0x26   :  { %302 = vmatmul.mubr.f32.vlgmr.msra.gmra.mrb[0].mxu1 %v160_v41  ;;  %1296 = vmatpush3.bf16.msra.mxu0 %v1295_v0  ;;  %v73_v41 = vld [vmem:[%s2367_s1 + $0x1c8] sm:$0xff]  ;;  %v58_v61 = vld [vmem:[%s2367_s1 + $0x150] sm:$0xff]  ;;  %v59_v0 = vld [vmem:[%s2367_s1 + $0x158] sm:$0xff]  ;;  %v1315_v6 = vpack.c.bf16 %v27_v60, %v26_v58 }
  0x27   :  { %1328 = vmatpush3.bf16.msra.mxu1 %v1327_v3  ;;  %1298 = vmatprep.subr.bf16.mxu0 %v1297_v4  ;;  %v1341_v48 = vpack.c.bf16 %v73_v41, %v72_v40  ;;  %v45_v3 = vld [vmem:[%s2367_s1 + $0xe8] sm:$0xff]  ;;  %v76_v4 = vld [vmem:[%s2367_s1 + $0x1e0] sm:$0xff]  ;;  %v1347_v7 = vpack.c.bf16 %v59_v0, %v58_v61  ;;  %v46_v15 = vld [vmem:[%s2367_s1 + $0xf0] sm:$0xff] }
  0x28   :  { %1330 = vmatprep.subr.bf16.mxu1 %v1329_v8  ;;  %393 = vmatprep.mubr.f32.mxu0 %v323_v12  ;;  %v77_v5 = vld [vmem:[%s2367_s1 + $0x1e8] sm:$0xff]  ;;  %v1317_v8 = vpack.c.bf16 %v45_v3, %v44_v2  ;;  %v28_v9 = vld [vmem:[%s2367_s1 + $0x60] sm:$0xff]  ;;  %v30_v23 = vld [vmem:[%s2367_s1 + $0x70] sm:$0xff] }
  0x29   :  { %463 = vmatprep.mubr.f32.mxu1 %v324_v16  ;;  %v29_v10 = vld [vmem:[%s2367_s1 + $0x68] sm:$0xff]  ;;  %v60_v11 = vld [vmem:[%s2367_s1 + $0x160] sm:$0xff]  ;;  %v1349_v12 = vpack.c.bf16 %v77_v5, %v76_v4  ;;  %v47_v16 = vld [vmem:[%s2367_s1 + $0xf8] sm:$0xff] }
  0x2a   :  { %1300 = vmatpush3.bf16.msra.mxu0 %v1299_v18  ;;  %v61_v14 = vld [vmem:[%s2367_s1 + $0x168] sm:$0xff]  ;;  %v78_v18 = vld [vmem:[%s2367_s1 + $0x1f0] sm:$0xff]  ;;  %v1321_v22 = vpack.c.bf16 %v47_v16, %v46_v15  ;;  %v63_v27 = vld [vmem:[%s2367_s1 + $0x178] sm:$0xff] }
  0x2b   :  { %1332 = vmatpush3.bf16.msra.mxu1 %v1331_v19  ;;  %1302 = vmatprep.subr.bf16.mxu0 %v1301_v20  ;;  %v79_v19 = vld [vmem:[%s2367_s1 + $0x1f8] sm:$0xff]  ;;  %v1319_v20 = vpack.c.bf16 %v29_v10, %v28_v9  ;;  %v1351_v21 = vpack.c.bf16 %v61_v14, %v60_v11  ;;  %v62_v25 = vld [vmem:[%s2367_s1 + $0x170] sm:$0xff]  ;;  %v486_v28 = vld [vmem:[%s2367_s1 + $0x480] sm:$0xff] }
  0x2c   :  { %1334 = vmatprep.subr.bf16.mxu1 %v1333_v24  ;;  %v31_v24 = vld [vmem:[%s2367_s1 + $0x78] sm:$0xff]  ;;  %v1353_v26 = vpack.c.bf16 %v79_v19, %v78_v18  ;;  %v487_v29 = vld [vmem:[%s2367_s1 + $0x488] sm:$0xff]  ;;  %v1355_v34 = vpack.c.bf16 %v63_v27, %v62_v25  ;;  %v502_v38 = vld [vmem:[%s2367_s1 + $0x500] sm:$0xff] }
  0x2d   :  { %v1323_v33 = vpack.c.bf16 %v31_v24, %v30_v23  ;;  %v1357_v35 = vpack.c.bf16 %v487_v29, %v486_v28  ;;  %v471_v37 = vld [vmem:[%s2367_s1 + $0x408] sm:$0xff]  ;;  %v488_v41 = vld [vmem:[%s2367_s1 + $0x490] sm:$0xff]  ;;  %v521_v45 = vld [vmem:[%s2367_s1 + $0x598] sm:$0xff] }
  0x2e   :  { %1304 = vmatpush3.bf16.msra.mxu0 %v1303_v30  ;;  %v518_v30 = vld [vmem:[%s2367_s1 + $0x580] sm:$0xff]  ;;  %v503_v40 = vld [vmem:[%s2367_s1 + $0x508] sm:$0xff]  ;;  %v473_v51 = vld [vmem:[%s2367_s1 + $0x418] sm:$0xff] }
  0x2f   :  { %1336 = vmatpush3.bf16.msra.mxu1 %v1335_v31  ;;  %1306 = vmatprep.subr.bf16.mxu0 %v1305_v32  ;;  %v519_v31 = vld [vmem:[%s2367_s1 + $0x588] sm:$0xff]  ;;  %v535_v32 = vcombine.high %v1745_v49, %v1745_v49  ;;  %v504_v52 = vld [vmem:[%s2367_s1 + $0x510] sm:$0xff]  ;;  %v505_v53 = vld [vmem:[%s2367_s1 + $0x518] sm:$0xff] }
  0x30   :  { %1338 = vmatprep.subr.bf16.mxu1 %v1337_v36  ;;  %v470_v36 = vld [vmem:[%s2367_s1 + $0x400] sm:$0xff]  ;;  %v1389_v39 = vpack.c.bf16 %v519_v31, %v518_v30  ;;  %v523_v58 = vld [vmem:[%s2367_s1 + $0x5a8] sm:$0xff]  ;;  %v492_v5 = vld [vmem:[%s2367_s1 + $0x4b0] sm:$0xff] }
  0x31   :  { %v1987_v46 = vrot.slane %v535_v32, %v1693_v17  ;;  %v1359_v47 = vpack.c.bf16 %v471_v37, %v470_v36  ;;  %v490_v54 = vld [vmem:[%s2367_s1 + $0x4a0] sm:$0xff]  ;;  %v475_v2 = vld [vmem:[%s2367_s1 + $0x428] sm:$0xff]  ;;  %v477_v14 = vld [vmem:[%s2367_s1 + $0x438] sm:$0xff] }
  0x32   :  { %1308 = vmatpush3.bf16.msra.mxu0 %v1307_v42  ;;  %v489_v42 = vld [vmem:[%s2367_s1 + $0x498] sm:$0xff]  ;;  %v506_v3 = vld [vmem:[%s2367_s1 + $0x520] sm:$0xff]  ;;  %v507_v4 = vld [vmem:[%s2367_s1 + $0x528] sm:$0xff] }
  0x33   :  { %1340 = vmatpush3.bf16.msra.mxu1 %v1339_v43  ;;  %1310 = vmatprep.subr.bf16.mxu0 %v1309_v44  ;;  %v1978_v43 = vrot.slane %v1745_v49, %v1693_v17  ;;  %v520_v44 = vld [vmem:[%s2367_s1 + $0x590] sm:$0xff]  ;;  %v1361_v50 = vpack.c.bf16 %v489_v42, %v488_v41  ;;  %v551_v60 = vcombine.high %v1987_v46, %v1987_v46  ;;  %v509_v18 = vld [vmem:[%s2367_s1 + $0x538] sm:$0xff]  ;;  %v494_v19 = vld [vmem:[%s2367_s1 + $0x4c0] sm:$0xff] }
  0x34   :  { %1342 = vmatprep.subr.bf16.mxu1 %v1341_v48  ;;  %v1391_v48 = vpack.c.bf16 %v503_v40, %v502_v38  ;;  %v472_v49 = vld [vmem:[%s2367_s1 + $0x410] sm:$0xff]  ;;  %v1393_v17 = vpack.c.bf16 %v521_v45, %v520_v44  ;;  %v1399_v10 = vpack.c.bf16 %v507_v4, %v506_v3  ;;  %v479_v27 = vld [vmem:[%s2367_s1 + $0x448] sm:$0xff]  ;;  %v510_v28 = vld [vmem:[%s2367_s1 + $0x540] sm:$0xff] }
  0x35   :  { %v1363_v61 = vpack.c.bf16 %v473_v51, %v472_v49  ;;  %v508_v15 = vld [vmem:[%s2367_s1 + $0x530] sm:$0xff]  ;;  %v511_v30 = vld [vmem:[%s2367_s1 + $0x548] sm:$0xff]  ;;  %v497_v32 = vld [vmem:[%s2367_s1 + $0x4d8] sm:$0xff] }
  0x36   :  { %1312 = vmatpush3.bf16.msra.mxu0 %v1311_v55  ;;  %v491_v55 = vld [vmem:[%s2367_s1 + $0x4a8] sm:$0xff]  ;;  %v1403_v24 = vpack.c.bf16 %v509_v18, %v508_v15  ;;  %v496_v31 = vld [vmem:[%s2367_s1 + $0x4d0] sm:$0xff]  ;;  %v1407_v36 = vpack.c.bf16 %v511_v30, %v510_v28  ;;  %v513_v42 = vld [vmem:[%s2367_s1 + $0x558] sm:$0xff] }
  0x37   :  { %1344 = vmatpush3.bf16.msra.mxu1 %v1343_v56  ;;  %1314 = vmatprep.subr.bf16.mxu0 %v1313_v57  ;;  %v550_v56 = vcombine.high %v1978_v43, %v1978_v43  ;;  %v522_v57 = vld [vmem:[%s2367_s1 + $0x5a0] sm:$0xff]  ;;  %v1365_v0 = vpack.c.bf16 %v491_v55, %v490_v54  ;;  %v1377_v37 = vpack.c.bf16 %v497_v32, %v496_v31  ;;  %v480_v38 = vld [vmem:[%s2367_s1 + $0x450] sm:$0xff]  ;;  %v499_v45 = vld [vmem:[%s2367_s1 + $0x4e8] sm:$0xff] }
  0x38   :  { %1346 = vmatprep.subr.bf16.mxu1 %v1345_v62  ;;  %v1395_v62 = vpack.c.bf16 %v505_v53, %v504_v52  ;;  %v512_v40 = vld [vmem:[%s2367_s1 + $0x550] sm:$0xff]  ;;  %v498_v44 = vld [vmem:[%s2367_s1 + $0x4e0] sm:$0xff] }
  0x39   :  { %v482_v49 = vld [vmem:[%s2367_s1 + $0x460] sm:$0xff]  ;;  %v1411_v51 = vpack.c.bf16 %v513_v42, %v512_v40  ;;  %v1381_v52 = vpack.c.bf16 %v499_v45, %v498_v44 }
  0x3a   :  { %1316 = vmatpush3.bf16.msra.mxu0 %v1315_v6  ;;  %v493_v6 = vld [vmem:[%s2367_s1 + $0x4b8] sm:$0xff]  ;;  %v514_v53 = vld [vmem:[%s2367_s1 + $0x560] sm:$0xff] }
  0x3b   :  { %1348 = vmatpush3.bf16.msra.mxu1 %v1347_v7  ;;  %1318 = vmatprep.subr.bf16.mxu0 %v1317_v8  ;;  %v524_v7 = vld [vmem:[%s2367_s1 + $0x5b0] sm:$0xff]  ;;  %v525_v8 = vld [vmem:[%s2367_s1 + $0x5b8] sm:$0xff]  ;;  %v1369_v11 = vpack.c.bf16 %v493_v6, %v492_v5 }
  0x3c   :  { %1350 = vmatprep.subr.bf16.mxu1 %v1349_v12  ;;  %v476_v12 = vld [vmem:[%s2367_s1 + $0x430] sm:$0xff]  ;;  %v1401_v16 = vpack.c.bf16 %v525_v8, %v524_v7 }
  0x3d   :  { %v1371_v23 = vpack.c.bf16 %v477_v14, %v476_v12 }
  0x3e   :  { %1320 = vmatpush3.bf16.msra.mxu0 %v1319_v20  ;;  %v495_v20 = vld [vmem:[%s2367_s1 + $0x4c8] sm:$0xff] }
  0x3f   :  { %1352 = vmatpush3.bf16.msra.mxu1 %v1351_v21  ;;  %1322 = vmatprep.subr.bf16.mxu0 %v1321_v22  ;;  %v526_v21 = vld [vmem:[%s2367_s1 + $0x5c0] sm:$0xff]  ;;  %v527_v22 = vld [vmem:[%s2367_s1 + $0x5c8] sm:$0xff]  ;;  %v1373_v25 = vpack.c.bf16 %v495_v20, %v494_v19 }
  0x40   :  { %1354 = vmatprep.subr.bf16.mxu1 %v1353_v26  ;;  %v478_v26 = vld [vmem:[%s2367_s1 + $0x440] sm:$0xff]  ;;  %v1405_v29 = vpack.c.bf16 %v527_v22, %v526_v21 }
  0x42   :  { %1324 = vmatpush3.bf16.msra.mxu0 %v1323_v33  ;;  %v528_v33 = vld [vmem:[%s2367_s1 + $0x5d0] sm:$0xff] }
  0x43   :  { %1356 = vmatpush3.bf16.msra.mxu1 %v1355_v34  ;;  %1358 = vmatprep.subr.bf16.mxu0 %v1357_v35  ;;  %v529_v34 = vld [vmem:[%s2367_s1 + $0x5d8] sm:$0xff]  ;;  %v1375_v35 = vpack.c.bf16 %v479_v27, %v478_v26 }
  0x44   :  { %1390 = vmatprep.subr.bf16.mxu1 %v1389_v39  ;;  %v481_v39 = vld [vmem:[%s2367_s1 + $0x458] sm:$0xff]  ;;  %v1409_v41 = vpack.c.bf16 %v529_v34, %v528_v33 }
  0x45   :  { %394 = vmatmul.mubr.f32.vlgmr.msra.gmra.mrb[2].mxu0 %v1766_v59  ;;  %v474_v59 = vld [vmem:[%s2367_s1 + $0x420] sm:$0xff] }
  0x46   :  { %464 = vmatmul.mubr.f32.vlgmr.msra.gmra.mrb[2].mxu1 %v1776_v63  ;;  %1360 = vmatpush3.bf16.msra.mxu0 %v1359_v47  ;;  %v1397_v63 = vpack.c.bf16 %v523_v58, %v522_v57  ;;  %v1367_v9 = vpack.c.bf16 %v475_v2, %v474_v59  ;;  %v530_v47 = vld [vmem:[%s2367_s1 + $0x5e0] sm:$0xff] }
  0x47   :  { %1392 = vmatpush3.bf16.msra.mxu1 %v1391_v48  ;;  %1362 = vmatprep.subr.bf16.mxu0 %v1361_v50  ;;  %v531_v48 = vld [vmem:[%s2367_s1 + $0x5e8] sm:$0xff]  ;;  %v1379_v50 = vpack.c.bf16 %v481_v39, %v480_v38 }
  0x48   :  { %1394 = vmatprep.subr.bf16.mxu1 %v1393_v17  ;;  %620 = vmatprep.mubr.f32.mxu0 %v550_v56  ;;  %v483_v17 = vld [vmem:[%s2367_s1 + $0x468] sm:$0xff] }
  0x49   :  { %690 = vmatprep.mubr.f32.mxu1 %v551_v60 }
  0x4a   :  { %1364 = vmatpush3.bf16.msra.mxu0 %v1363_v61 }
  0x4b   :  { %1396 = vmatpush3.bf16.msra.mxu1 %v1395_v62  ;;  %1366 = vmatprep.subr.bf16.mxu0 %v1365_v0 }
  0x4c   :  { %1398 = vmatprep.subr.bf16.mxu1 %v1397_v63 }
  0x4e   :  { %1368 = vmatpush3.bf16.msra.mxu0 %v1367_v9 }
  0x4f   :  { %1400 = vmatpush3.bf16.msra.mxu1 %v1399_v10  ;;  %1370 = vmatprep.subr.bf16.mxu0 %v1369_v11 }
  0x50   :  { %1402 = vmatprep.subr.bf16.mxu1 %v1401_v16 }
  0x52   :  { %1372 = vmatpush3.bf16.msra.mxu0 %v1371_v23 }
  0x53   :  { %1404 = vmatpush3.bf16.msra.mxu1 %v1403_v24  ;;  %1374 = vmatprep.subr.bf16.mxu0 %v1373_v25 }
  0x54   :  { %1406 = vmatprep.subr.bf16.mxu1 %v1405_v29 }
  0x56   :  { %1376 = vmatpush3.bf16.msra.mxu0 %v1375_v35 }
  0x57   :  { %1408 = vmatpush3.bf16.msra.mxu1 %v1407_v36  ;;  %1378 = vmatprep.subr.bf16.mxu0 %v1377_v37 }
  0x58   :  { %8 = vsyncpa [#allocation3], 0  ;;  %1410 = vmatprep.subr.bf16.mxu1 %v1409_v41  ;;  %v1413_v54 = vpack.c.bf16 %v531_v48, %v530_v47  ;;  %v515_v55 = vld [vmem:[%s2367_s1 + $0x568] sm:$0xff]  ;;  %v500_v56 = vld [vmem:[%s2367_s1 + $0x4f0] sm:$0xff]  ;;  %v1383_v61 = vpack.c.bf16 %v483_v17, %v482_v49  ;;  %v778_v33 = vcombine.high %v1779_v1, %v1779_v1  ;;  %v779_v36 = vcombine.high %v1802_v13, %v1802_v13  ;;  %s1513_s26 = smov [#allocation2]  }
  0x59   :  { %v501_v57 = vld [vmem:[%s2367_s1 + $0x4f8] sm:$0xff]  ;;  %v532_v58 = vld [vmem:[%s2367_s1 + $0x5f0] sm:$0xff]  ;;  %v1415_v62 = vpack.c.bf16 %v515_v55, %v514_v53  ;;  %v714_v5 = vld [vmem:[%s2367_s1 + $0x680] sm:$0xff]  ;;  %s940_s27 = sshll.u32 %s1513_s26, 4  ;;  %s941_s27 = int_to_ptr.vmem [resolvable:$true] %s940_s27 }
  0x5a   :  { %v533_v60 = vld [vmem:[%s2367_s1 + $0x5f8] sm:$0xff]  ;;  %1380 = vmatpush3.bf16.msra.mxu0 %v1379_v50  ;;  %v1385_v0 = vpack.c.bf16 %v501_v57, %v500_v56  ;;  %v484_v59 = vld [vmem:[%s2367_s1 + $0x470] sm:$0xff]  ;;  %v715_v6 = vld [vmem:[%s2367_s1 + $0x688] sm:$0xff]  ;;  %s1488_s28 = scalar_lea.vmem %s941_s27, 32  ;;  %p1493_p1 = scmp.lt.s32.totalorder %s941_s27, %s941_s27 }
  0x5b   :  { %1412 = vmatpush3.bf16.msra.mxu1 %v1411_v51  ;;  %1382 = vmatprep.subr.bf16.mxu0 %v1381_v52  ;;  %v485_v2 = vld [vmem:[%s2367_s1 + $0x478] sm:$0xff]  ;;  %v516_v3 = vld [vmem:[%s2367_s1 + $0x570] sm:$0xff]  ;;  %v1417_v63 = vpack.c.bf16 %v533_v60, %v532_v58  ;;  %v746_v7 = vld [vmem:[%s2367_s1 + $0x780] sm:$0xff]  ;;  %v1421_v11 = vpack.c.bf16 %v715_v6, %v714_v5  ;;  %p1489_p0 = scmp.ne.s32.totalorder %s941_s27, %s1488_s28  ;;  %p1494_p2 = scmp.lt.s32.totalorder %s1488_s28, %s1488_s28 }
  0x5c   :  { %1414 = vmatprep.subr.bf16.mxu1 %v1413_v54  ;;  %v517_v4 = vld [vmem:[%s2367_s1 + $0x578] sm:$0xff]  ;;  %v747_v8 = vld [vmem:[%s2367_s1 + $0x788] sm:$0xff]  ;;  %v1387_v9 = vpack.c.bf16 %v485_v2, %v484_v59  ;;  %v698_v12 = vld [vmem:[%s2367_s1 + $0x600] sm:$0xff] }
  0x5d   :  { %v1419_v10 = vpack.c.bf16 %v517_v4, %v516_v3  ;;  %v699_v14 = vld [vmem:[%s2367_s1 + $0x608] sm:$0xff]  ;;  %v730_v15 = vld [vmem:[%s2367_s1 + $0x700] sm:$0xff]  ;;  %v1453_v16 = vpack.c.bf16 %v747_v8, %v746_v7  ;;  %v716_v19 = vld [vmem:[%s2367_s1 + $0x690] sm:$0xff]  ;;  %p1495_p3 = por %p1494_p2, %p1493_p1 }
  0x5e   :  { %1384 = vmatpush3.bf16.msra.mxu0 %v1383_v61  ;;  %v731_v18 = vld [vmem:[%s2367_s1 + $0x708] sm:$0xff]  ;;  %v717_v20 = vld [vmem:[%s2367_s1 + $0x698] sm:$0xff]  ;;  %v748_v21 = vld [vmem:[%s2367_s1 + $0x790] sm:$0xff]  ;;  %v1423_v23 = vpack.c.bf16 %v699_v14, %v698_v12 }
  0x5f   :  { %1416 = vmatpush3.bf16.msra.mxu1 %v1415_v62  ;;  %1386 = vmatprep.subr.bf16.mxu0 %v1385_v0  ;;  %v749_v22 = vld [vmem:[%s2367_s1 + $0x798] sm:$0xff]  ;;  %v1455_v24 = vpack.c.bf16 %v731_v18, %v730_v15  ;;  %v1425_v25 = vpack.c.bf16 %v717_v20, %v716_v19  ;;  %v700_v26 = vld [vmem:[%s2367_s1 + $0x610] sm:$0xff]  ;;  %v718_v31 = vld [vmem:[%s2367_s1 + $0x6a0] sm:$0xff]  ;;  %p1496_p4 = pnand %p1495_p3, %p1489_p0 }
  0x60   :  { %1418 = vmatprep.subr.bf16.mxu1 %v1417_v63  ;;  %v701_v27 = vld [vmem:[%s2367_s1 + $0x618] sm:$0xff]  ;;  %v732_v28 = vld [vmem:[%s2367_s1 + $0x710] sm:$0xff]  ;;  %v1457_v29 = vpack.c.bf16 %v749_v22, %v748_v21  ;;  %v719_v32 = vld [vmem:[%s2367_s1 + $0x6a8] sm:$0xff] }
  0x61   :  { %v733_v30 = vld [vmem:[%s2367_s1 + $0x718] sm:$0xff]  ;;  %v750_v34 = vld [vmem:[%s2367_s1 + $0x7a0] sm:$0xff]  ;;  %v751_v35 = vld [vmem:[%s2367_s1 + $0x7a8] sm:$0xff]  ;;  %v1427_v37 = vpack.c.bf16 %v701_v27, %v700_v26  ;;  %v1429_v39 = vpack.c.bf16 %v719_v32, %v718_v31 }
  0x62   :  { %1388 = vmatpush3.bf16.msra.mxu0 %v1387_v9  ;;  %v1459_v38 = vpack.c.bf16 %v733_v30, %v732_v28  ;;  %v703_v40 = vld [vmem:[%s2367_s1 + $0x628] sm:$0xff]  ;;  %v734_v41 = vld [vmem:[%s2367_s1 + $0x720] sm:$0xff]  ;;  %v720_v44 = vld [vmem:[%s2367_s1 + $0x6b0] sm:$0xff] }
  0x63   :  { %1420 = vmatpush3.bf16.msra.mxu1 %v1419_v10  ;;  %1422 = vmatprep.subr.bf16.mxu0 %v1421_v11  ;;  %v735_v42 = vld [vmem:[%s2367_s1 + $0x728] sm:$0xff]  ;;  %v721_v45 = vld [vmem:[%s2367_s1 + $0x6b8] sm:$0xff]  ;;  %v752_v47 = vld [vmem:[%s2367_s1 + $0x7b0] sm:$0xff] }
  0x64   :  { %1454 = vmatprep.subr.bf16.mxu1 %v1453_v16  ;;  %v753_v48 = vld [vmem:[%s2367_s1 + $0x7b8] sm:$0xff]  ;;  %v1463_v49 = vpack.c.bf16 %v735_v42, %v734_v41  ;;  %v1433_v51 = vpack.c.bf16 %v721_v45, %v720_v44  ;;  %v704_v52 = vld [vmem:[%s2367_s1 + $0x630] sm:$0xff]  ;;  %v722_v56 = vld [vmem:[%s2367_s1 + $0x6c0] sm:$0xff] }
  0x65   :  { %621 = vmatmul.mubr.f32.vlgmr.msra.gmra.mrb[4].mxu0 %v1978_v43  ;;  %v702_v43 = vld [vmem:[%s2367_s1 + $0x620] sm:$0xff]  ;;  %v705_v17 = vld [vmem:[%s2367_s1 + $0x638] sm:$0xff]  ;;  %v736_v53 = vld [vmem:[%s2367_s1 + $0x730] sm:$0xff]  ;;  %v1465_v54 = vpack.c.bf16 %v753_v48, %v752_v47 }
  0x66   :  { %691 = vmatmul.mubr.f32.vlgmr.msra.gmra.mrb[4].mxu1 %v1987_v46  ;;  %1424 = vmatpush3.bf16.msra.mxu0 %v1423_v23  ;;  %v1461_v46 = vpack.c.bf16 %v751_v35, %v750_v34  ;;  %v1431_v50 = vpack.c.bf16 %v703_v40, %v702_v43  ;;  %v737_v55 = vld [vmem:[%s2367_s1 + $0x738] sm:$0xff]  ;;  %v723_v57 = vld [vmem:[%s2367_s1 + $0x6c8] sm:$0xff]  ;;  %v754_v58 = vld [vmem:[%s2367_s1 + $0x7c0] sm:$0xff]  ;;  %v1435_v61 = vpack.c.bf16 %v705_v17, %v704_v52 }
  0x67   :  { %1456 = vmatpush3.bf16.msra.mxu1 %v1455_v24  ;;  %1426 = vmatprep.subr.bf16.mxu0 %v1425_v25  ;;  %v755_v60 = vld [vmem:[%s2367_s1 + $0x7c8] sm:$0xff]  ;;  %v1467_v62 = vpack.c.bf16 %v737_v55, %v736_v53  ;;  %v1437_v0 = vpack.c.bf16 %v723_v57, %v722_v56  ;;  %v706_v59 = vld [vmem:[%s2367_s1 + $0x640] sm:$0xff]  ;;  %v724_v5 = vld [vmem:[%s2367_s1 + $0x6d0] sm:$0xff] }
  0x68   :  { %1458 = vmatprep.subr.bf16.mxu1 %v1457_v29  ;;  %848 = vmatprep.mubr.f32.mxu0 %v778_v33  ;;  %v707_v2 = vld [vmem:[%s2367_s1 + $0x648] sm:$0xff]  ;;  %v738_v3 = vld [vmem:[%s2367_s1 + $0x740] sm:$0xff]  ;;  %v1469_v63 = vpack.c.bf16 %v755_v60, %v754_v58  ;;  %v725_v6 = vld [vmem:[%s2367_s1 + $0x6d8] sm:$0xff] }
  0x69   :  { %918 = vmatprep.mubr.f32.mxu1 %v779_v36  ;;  %v739_v4 = vld [vmem:[%s2367_s1 + $0x748] sm:$0xff]  ;;  %v756_v7 = vld [vmem:[%s2367_s1 + $0x7d0] sm:$0xff]  ;;  %v757_v8 = vld [vmem:[%s2367_s1 + $0x7d8] sm:$0xff]  ;;  %v1439_v9 = vpack.c.bf16 %v707_v2, %v706_v59  ;;  %v1441_v11 = vpack.c.bf16 %v725_v6, %v724_v5 }
  0x6a   :  { %1428 = vmatpush3.bf16.msra.mxu0 %v1427_v37  ;;  %v1471_v10 = vpack.c.bf16 %v739_v4, %v738_v3  ;;  %v708_v12 = vld [vmem:[%s2367_s1 + $0x650] sm:$0xff]  ;;  %v709_v14 = vld [vmem:[%s2367_s1 + $0x658] sm:$0xff]  ;;  %v1473_v16 = vpack.c.bf16 %v757_v8, %v756_v7  ;;  %v726_v19 = vld [vmem:[%s2367_s1 + $0x6e0] sm:$0xff] }
  0x6b   :  { %1460 = vmatpush3.bf16.msra.mxu1 %v1459_v38  ;;  %1430 = vmatprep.subr.bf16.mxu0 %v1429_v39  ;;  %v740_v15 = vld [vmem:[%s2367_s1 + $0x750] sm:$0xff]  ;;  %v741_v18 = vld [vmem:[%s2367_s1 + $0x758] sm:$0xff]  ;;  %v727_v20 = vld [vmem:[%s2367_s1 + $0x6e8] sm:$0xff]  ;;  %v1443_v23 = vpack.c.bf16 %v709_v14, %v708_v12 }
  0x6c   :  { %1462 = vmatprep.subr.bf16.mxu1 %v1461_v46  ;;  %v758_v21 = vld [vmem:[%s2367_s1 + $0x7e0] sm:$0xff]  ;;  %v759_v22 = vld [vmem:[%s2367_s1 + $0x7e8] sm:$0xff]  ;;  %v1475_v24 = vpack.c.bf16 %v741_v18, %v740_v15  ;;  %v1445_v25 = vpack.c.bf16 %v727_v20, %v726_v19  ;;  %v728_v31 = vld [vmem:[%s2367_s1 + $0x6f0] sm:$0xff] }
  0x6d   :  { %v710_v26 = vld [vmem:[%s2367_s1 + $0x660] sm:$0xff]  ;;  %v711_v27 = vld [vmem:[%s2367_s1 + $0x668] sm:$0xff]  ;;  %v1477_v29 = vpack.c.bf16 %v759_v22, %v758_v21  ;;  %v729_v32 = vld [vmem:[%s2367_s1 + $0x6f8] sm:$0xff] }
  0x6e   :  { %1432 = vmatpush3.bf16.msra.mxu0 %v1431_v50  ;;  %v742_v28 = vld [vmem:[%s2367_s1 + $0x760] sm:$0xff]  ;;  %v743_v30 = vld [vmem:[%s2367_s1 + $0x768] sm:$0xff]  ;;  %v760_v33 = vld [vmem:[%s2367_s1 + $0x7f0] sm:$0xff]  ;;  %v1447_v35 = vpack.c.bf16 %v711_v27, %v710_v26  ;;  %v1449_v37 = vpack.c.bf16 %v729_v32, %v728_v31 }
  0x6f   :  { %1464 = vmatpush3.bf16.msra.mxu1 %v1463_v49  ;;  %1434 = vmatprep.subr.bf16.mxu0 %v1433_v51  ;;  %v761_v34 = vld [vmem:[%s2367_s1 + $0x7f8] sm:$0xff]  ;;  %v1479_v36 = vpack.c.bf16 %v743_v30, %v742_v28  ;;  %v712_v38 = vld [vmem:[%s2367_s1 + $0x670] sm:$0xff] }
  0x70   :  { %1466 = vmatprep.subr.bf16.mxu1 %v1465_v54  ;;  %v713_v39 = vld [vmem:[%s2367_s1 + $0x678] sm:$0xff]  ;;  %v1481_v43 = vpack.c.bf16 %v761_v34, %v760_v33  ;;  %v744_v40 = vld [vmem:[%s2367_s1 + $0x770] sm:$0xff] }
  0x71   :  { %v745_v41 = vld [vmem:[%s2367_s1 + $0x778] sm:$0xff]  ;;  %v1451_v46 = vpack.c.bf16 %v713_v39, %v712_v38 }
  0x72   :  { %1436 = vmatpush3.bf16.msra.mxu0 %v1435_v61  ;;  %v1483_v42 = vpack.c.bf16 %v745_v41, %v744_v40 }
  0x73   :  { %1468 = vmatpush3.bf16.msra.mxu1 %v1467_v62  ;;  %1438 = vmatprep.subr.bf16.mxu0 %v1437_v0 }
  0x74   :  { %1470 = vmatprep.subr.bf16.mxu1 %v1469_v63 }
  0x76   :  { %1440 = vmatpush3.bf16.msra.mxu0 %v1439_v9  ;;  %v948_v9 = vld [vmem:[%s2368_s2] ss:$0 sm:$0xff] }
  0x77   :  { %1472 = vmatpush3.bf16.msra.mxu1 %v1471_v10  ;;  %1442 = vmatprep.subr.bf16.mxu0 %v1441_v11 }
  0x78   :  { %1474 = vmatprep.subr.bf16.mxu1 %v1473_v16 }
  0x7a   :  { %1444 = vmatpush3.bf16.msra.mxu0 %v1443_v23 }
  0x7b   :  { %1476 = vmatpush3.bf16.msra.mxu1 %v1475_v24  ;;  %1446 = vmatprep.subr.bf16.mxu0 %v1445_v25 }
  0x7c   :  { %1478 = vmatprep.subr.bf16.mxu1 %v1477_v29 }
  0x7e   :  { %1448 = vmatpush3.bf16.msra.mxu0 %v1447_v35 }
  0x7f   :  { %1480 = vmatpush3.bf16.msra.mxu1 %v1479_v36  ;;  %1450 = vmatprep.subr.bf16.mxu0 %v1449_v37 }
  0x80   :  { %1482 = vmatprep.subr.bf16.mxu1 %v1481_v43 }
  0x82   :  { %1452 = vmatpush3.bf16.msra.mxu0 %v1451_v46 }
  0x83   :  { %1484 = vmatpush3.bf16.msra.mxu1 %v1483_v42 }
  0x85   :  { %849 = vmatmul.mubr.f32.vlgmr.msra.gmra.mrb[6].mxu0 %v1779_v1 }
  0x86   :  { %919 = vmatmul.mubr.f32.vlgmr.msra.gmra.mrb[6].mxu1 %v1802_v13 }
  0xf8   :  { %v981_v44 = vpop.f32.mrb[0].mxu0 }
  0xf9   :  { %v1016_v45 = vpop.f32.mrb[0].mxu1  ;;  %v982_v47 = vpop.f32.mrb[1].mxu0 }
  0xfa   :  { %v983_v48 = vadd.f32 %v982_v47, %v981_v44  ;;  %v1017_v50 = vpop.f32.mrb[1].mxu1 }
  0xfb   :  { %v1018_v49 = vadd.f32 %v1017_v50, %v1016_v45 }
  0xfd   :  { %v304_v51 = vadd.f32 %v1018_v49, %v983_v48 }
 0x118   :  { %v1051_v52 = vpop.f32.mrb[2].mxu0 }
 0x119   :  { %v1086_v17 = vpop.f32.mrb[2].mxu1  ;;  %v1052_v53 = vpop.f32.mrb[3].mxu0 }
 0x11a   :  { %v1053_v54 = vadd.f32 %v1052_v53, %v1051_v52  ;;  %v1087_v55 = vpop.f32.mrb[3].mxu1 }
 0x11b   :  { %v1088_v56 = vadd.f32 %v1087_v55, %v1086_v17 }
 0x11c   :  { %v396_v57 = vadd.f32 %v1053_v54, %v304_v51 }
 0x11e   :  { %v466_v58 = vadd.f32 %v1088_v56, %v396_v57 }
 0x138   :  { %v1121_v60 = vpop.f32.mrb[4].mxu0 }
 0x139   :  { %v1156_v61 = vpop.f32.mrb[4].mxu1  ;;  %v1122_v1 = vpop.f32.mrb[5].mxu0 }
 0x13a   :  { %v1123_v62 = vadd.f32 %v1122_v1, %v1121_v60  ;;  %v1157_v13 = vpop.f32.mrb[5].mxu1 }
 0x13b   :  { %v1158_v0 = vadd.f32 %v1157_v13, %v1156_v61 }
 0x13d   :  { %v693_v59 = vadd.f32 %v1158_v0, %v1123_v62 }
 0x13f   :  { %v696_v2 = vadd.f32 %v693_v59, %v466_v58 }
 0x158   :  { %v1191_v3 = vpop.f32.mrb[6].mxu0 }
 0x159   :  { %v1226_v63 = vpop.f32.mrb[6].mxu1  ;;  %v1192_v4 = vpop.f32.mrb[7].mxu0 }
 0x15a   :  { %v1193_v5 = vadd.f32 %v1192_v4, %v1191_v3  ;;  %v1227_v6 = vpop.f32.mrb[7].mxu1 }
 0x15b   :  { %v1228_v7 = vadd.f32 %v1227_v6, %v1226_v63 }
 0x15d   :  { %v921_v8 = vadd.f32 %v1228_v7, %v1193_v5 }
 0x15f   :  { %v924_v10 = vadd.f32 %v921_v8, %v696_v2 }
 0x161   :  { %v932_v11 = vadd.f32 %v948_v9, %v924_v10 }
 0x163   :  { %933 = vst [vmem:[#allocation2] sm:$0x3] %v932_v11 }
 0x164   :  { %1499 = shalt.err (!%p1496_p4)
}
 0x165   :  { %s1500_s4 = scalar_lea.hbm %s2369_s3, 32 }
 0x166   :  { %p1501_p5 = scmp.ne.s32.totalorder %s2369_s3, %s1500_s4  ;;  %p1504_p6 = scmp.lt.u32.totalorder %s1500_s4, %s2369_s3 }
 0x168   :  { %p1506_p7 = pnand %p1504_p6, %p1501_p5 }
 0x16a   :  { %1509 = shalt.err (!%p1506_p7)
}
 0x16b   :  { %943 = dma.vmem_to_hbm [thread:$0]  %s941_s27, 32, %s2369_s3, [#allocation3]  }
 0x16c   :  { %1510 = dma.done.wait [#allocation3], 32  }
 0x16d   :  { %1511 = vsyncadd [#allocation3], 4294967264 }
 0x16e   :  { %947 = vsyncpa [#allocation3], 1 }

</bundles_post_ra>
